<compile_context>
chip_gen: v7x
topology: tpu7x:2x2x1
jax: 0.10.0
libtpu: 0.0.40
codegen_flags: <defaults>
</compile_context>

<pallas_src>
import jax
import jax.numpy as jnp
from jax.experimental import pallas as pl
from jax.experimental.pallas import tpu as pltpu

INPUT_SIZE = 32
H1, H2, H3 = 256, 128, 256
W4_ROWS = 8  # fc4 weight stored transposed/padded as (8, 256); row 0 is real.


def _round_up(x, m):
    return ((x + m - 1) // m) * m


def nfl_mlp_kernel(x_ref, w1_ref, b1_ref, w2_ref, b2_ref,
                   w3_ref, b3_ref, w4t_ref, b4_ref, o_ref):
    # fc1 + ReLU  (bf16 MXU operands, f32 accumulate, f32 epilogue)
    h = jnp.dot(x_ref[...].astype(jnp.bfloat16), w1_ref[...],
                preferred_element_type=jnp.float32) + b1_ref[...]
    h = jnp.maximum(h, 0.0)
    # dropout1: identity in eval mode

    # fc2 + ReLU
    h = jnp.dot(h.astype(jnp.bfloat16), w2_ref[...],
                preferred_element_type=jnp.float32) + b2_ref[...]
    h = jnp.maximum(h, 0.0)
    # dropout2: identity in eval mode

    # fc3 + ReLU
    h = jnp.dot(h.astype(jnp.bfloat16), w3_ref[...],
                preferred_element_type=jnp.float32) + b3_ref[...]
    h = jnp.maximum(h, 0.0)

    # fc4 + Sigmoid, computed transposed: (8, 256) x (TB, 256)^T -> (8, TB).
    # Only row 0 of w4t is real; slice it before the (now tiny) sigmoid so the
    # stored output is a lane-dense (1, TB) row, not a 128-wide padded slab.
    logits = jax.lax.dot_general(
        w4t_ref[...], h.astype(jnp.bfloat16),
        dimension_numbers=(((1,), (1,)), ((), ())),
        preferred_element_type=jnp.float32)              # (W4_ROWS, TB)
    out = jax.nn.sigmoid(logits[0:1, :] + b4_ref[...])   # (1, TB), f32
    o_ref[...] = out[None]                               # (1, 1, TB)


def init_params(key, input_size):
    """Deterministic init mimicking nn.Linear's U(-1/sqrt(fan_in), 1/sqrt(fan_in)).

    Weights are stored as (in_features, out_features), i.e. transposed relative
    to PyTorch's nn.Linear, so the kernel computes y = x @ W + b directly.
    """
    dims = [(input_size, H1), (H1, H2), (H2, H3), (H3, 1)]
    params = []
    for i, (fan_in, fan_out) in enumerate(dims):
        kw, kb = jax.random.split(jax.random.fold_in(key, i))
        bound = 1.0 / jnp.sqrt(float(fan_in))
        w = jax.random.uniform(kw, (fan_in, fan_out), jnp.float32, -bound, bound)
        b = jax.random.uniform(kb, (1, fan_out), jnp.float32, -bound, bound)
        params += [w, b]
    return tuple(params)


def prepare_params(params):
    """One-time packing into kernel layout (bf16 weights, padded/transposed fc4)."""
    w1, b1, w2, b2, w3, b3, w4, b4 = params
    w4t = jnp.zeros((W4_ROWS, H3), jnp.bfloat16).at[0, :].set(
        w4[:, 0].astype(jnp.bfloat16))
    return (w1.astype(jnp.bfloat16), b1.reshape(1, H1).astype(jnp.float32),
            w2.astype(jnp.bfloat16), b2.reshape(1, H2).astype(jnp.float32),
            w3.astype(jnp.bfloat16), b3.reshape(1, H3).astype(jnp.float32),
            w4t, b4.reshape(1, 1).astype(jnp.float32))


def nfl_predictor(x, prepped, *, block_b=None):
    """x: (B, INPUT_SIZE) float32 -> (B, 1) float32."""
    B = x.shape[0]
    w1, b1, w2, b2, w3, b3, w4t, b4 = prepped

    # Batch tile: multiple of 256 (MXU edge on v6e/v7x), capped at 1024 so the
    # working set stays a few MiB even on v7x's smaller (64 MiB) VMEM.
    if block_b is None:
        block_b = max(256, min(1024, _round_up(B, 256)))
    tb = block_b
    b_pad = _round_up(B, tb)
    num_tiles = b_pad // tb

    x_pad = x if b_pad == B else jnp.pad(x, ((0, b_pad - B), (0, 0)))

    resident = lambda shape: pl.BlockSpec(shape, lambda i: (0, 0))

    flops = 2 * b_pad * (INPUT_SIZE * H1 + H1 * H2 + H2 * H3 + H3 * W4_ROWS)
    bytes_accessed = (
        2 * (INPUT_SIZE * H1 + H1 * H2 + H2 * H3 + W4_ROWS * H3)  # bf16 weights
        + 4 * (H1 + H2 + H3 + 1)                                  # f32 biases
        + 4 * b_pad * INPUT_SIZE                                  # x in
        + 4 * b_pad)                                              # packed out

    out = pl.pallas_call(
        nfl_mlp_kernel,
        out_shape=jax.ShapeDtypeStruct((num_tiles, 1, tb), jnp.float32),
        grid=(num_tiles,),
        in_specs=[
            pl.BlockSpec((tb, INPUT_SIZE), lambda i: (i, 0)),
            resident((INPUT_SIZE, H1)), resident((1, H1)),
            resident((H1, H2)), resident((1, H2)),
            resident((H2, H3)), resident((1, H3)),
            resident((W4_ROWS, H3)), resident((1, 1)),
        ],
        out_specs=pl.BlockSpec((1, 1, tb), lambda i: (i, 0, 0)),
        compiler_params=pltpu.CompilerParams(
            dimension_semantics=("parallel",)),
        cost_estimate=pl.CostEstimate(
            flops=flops, transcendentals=b_pad, bytes_accessed=bytes_accessed),
    )(x_pad, w1, b1, w2, b2, w3, b3, w4t, b4)

    return out.reshape(b_pad, 1)[:B]


def reference_forward(x, prepped):
    """Pure-JAX reference using the same bf16-operand / f32-accumulate math."""
    w1, b1, w2, b2, w3, b3, w4t, b4 = prepped
    h = jnp.maximum(jnp.dot(x.astype(jnp.bfloat16), w1,
                            preferred_element_type=jnp.float32) + b1, 0.0)
    h = jnp.maximum(jnp.dot(h.astype(jnp.bfloat16), w2,
                            preferred_element_type=jnp.float32) + b2, 0.0)
    h = jnp.maximum(jnp.dot(h.astype(jnp.bfloat16), w3,
                            preferred_element_type=jnp.float32) + b3, 0.0)
    logits = jnp.dot(h.astype(jnp.bfloat16), w4t[0:1, :].T,
                     preferred_element_type=jnp.float32) + b4
    return jax.nn.sigmoid(logits)


if __name__ == "__main__":
    key = jax.random.PRNGKey(0)
    k_x, k_p = jax.random.split(key)

    B = 8
    x = jax.random.normal(k_x, (B, INPUT_SIZE), jnp.float32)
    params = init_params(k_p, INPUT_SIZE)
    prepped = prepare_params(params)   # one-time: bf16 cast + fc4 pad/transpose

    predict = jax.jit(lambda xx: nfl_predictor(xx, prepped))
    y = predict(x)
    jax.block_until_ready(y)

    y_ref = reference_forward(x, prepped)
    assert y.shape == (B, 1)
    # bf16 MXU operands => tolerance looser than a pure-f32 check.
    assert jnp.allclose(y, y_ref, atol=2e-3, rtol=1e-3), (
        float(jnp.max(jnp.abs(y - y_ref))))

    print("KERNEL_OK")
</pallas_src>

<mosaic_0001>
module attributes {stable_mosaic.version = 11 : i64} {
  func.func @nfl_mlp_kernel(%arg0: i32, %arg1: memref<256x32xf32, #tpu.memory_space<vmem>>, %arg2: memref<32x256xbf16, #tpu.memory_space<vmem>>, %arg3: memref<1x256xf32, #tpu.memory_space<vmem>>, %arg4: memref<256x128xbf16, #tpu.memory_space<vmem>>, %arg5: memref<1x128xf32, #tpu.memory_space<vmem>>, %arg6: memref<128x256xbf16, #tpu.memory_space<vmem>>, %arg7: memref<1x256xf32, #tpu.memory_space<vmem>>, %arg8: memref<8x256xbf16, #tpu.memory_space<vmem>>, %arg9: memref<1x1xf32, #tpu.memory_space<vmem>>, %arg10: memref<1x1x256xf32, #tpu.memory_space<vmem>>) attributes {dimension_semantics = [#tpu.dimension_semantics<parallel>], iteration_bounds = array<i64: 1>, scalar_prefetch = 0 : i64, scratch_operands = 0 : i64, tpu.core_type = #tpu.core_type<tc>, window_params = [{transform_indices = @transform_0, window_bounds = array<i64: 256, 32>}, {pipeline_mode = #tpu.pipeline_mode<synchronous>, transform_indices = @transform_1, window_bounds = array<i64: 32, 256>}, {pipeline_mode = #tpu.pipeline_mode<synchronous>, transform_indices = @transform_2, window_bounds = array<i64: 1, 256>}, {pipeline_mode = #tpu.pipeline_mode<synchronous>, transform_indices = @transform_3, window_bounds = array<i64: 256, 128>}, {pipeline_mode = #tpu.pipeline_mode<synchronous>, transform_indices = @transform_4, window_bounds = array<i64: 1, 128>}, {pipeline_mode = #tpu.pipeline_mode<synchronous>, transform_indices = @transform_5, window_bounds = array<i64: 128, 256>}, {pipeline_mode = #tpu.pipeline_mode<synchronous>, transform_indices = @transform_6, window_bounds = array<i64: 1, 256>}, {pipeline_mode = #tpu.pipeline_mode<synchronous>, transform_indices = @transform_7, window_bounds = array<i64: 8, 256>}, {pipeline_mode = #tpu.pipeline_mode<synchronous>, transform_indices = @transform_8, window_bounds = array<i64: 1, 1>}, {transform_indices = @transform_9, window_bounds = array<i64: 1, 1, 256>}]} {
    %c0 = arith.constant 0 : index
    %c0_0 = arith.constant 0 : index
    %0 = vector.load %arg1[%c0, %c0_0] : memref<256x32xf32, #tpu.memory_space<vmem>>, vector<256x32xf32>
    %1 = arith.truncf %0 : vector<256x32xf32> to vector<256x32xbf16>
    %c0_1 = arith.constant 0 : index
    %c0_2 = arith.constant 0 : index
    %2 = vector.load %arg2[%c0_1, %c0_2] : memref<32x256xbf16, #tpu.memory_space<vmem>>, vector<32x256xbf16>
    %cst = arith.constant dense<0.000000e+00> : vector<256x256xf32>
    %3 = tpu.matmul %1, %2, %cst {dimension_numbers = #tpu.dot_dimension_numbers<[1], [0], [0], [1], [0, 0, 1, 1], [], []>} : vector<256x32xbf16>, vector<32x256xbf16>, vector<256x256xf32> -> vector<256x256xf32>
    %c0_3 = arith.constant 0 : index
    %c0_4 = arith.constant 0 : index
    %4 = vector.load %arg3[%c0_3, %c0_4] : memref<1x256xf32, #tpu.memory_space<vmem>>, vector<1x256xf32>
    %5 = vector.broadcast %4 : vector<1x256xf32> to vector<256x256xf32>
    %6 = arith.addf %3, %5 : vector<256x256xf32>
    %cst_5 = arith.constant 0.000000e+00 : f32
    %7 = vector.broadcast %cst_5 : f32 to vector<256x256xf32>
    %8 = arith.maximumf %6, %7 : vector<256x256xf32>
    %9 = arith.truncf %8 : vector<256x256xf32> to vector<256x256xbf16>
    %c0_6 = arith.constant 0 : index
    %c0_7 = arith.constant 0 : index
    %10 = vector.load %arg4[%c0_6, %c0_7] : memref<256x128xbf16, #tpu.memory_space<vmem>>, vector<256x128xbf16>
    %cst_8 = arith.constant dense<0.000000e+00> : vector<256x128xf32>
    %11 = tpu.matmul %9, %10, %cst_8 {dimension_numbers = #tpu.dot_dimension_numbers<[1], [0], [0], [1], [0, 0, 1, 1], [], []>} : vector<256x256xbf16>, vector<256x128xbf16>, vector<256x128xf32> -> vector<256x128xf32>
    %c0_9 = arith.constant 0 : index
    %c0_10 = arith.constant 0 : index
    %12 = vector.load %arg5[%c0_9, %c0_10] : memref<1x128xf32, #tpu.memory_space<vmem>>, vector<1x128xf32>
    %13 = vector.broadcast %12 : vector<1x128xf32> to vector<256x128xf32>
    %14 = arith.addf %11, %13 : vector<256x128xf32>
    %cst_11 = arith.constant 0.000000e+00 : f32
    %15 = vector.broadcast %cst_11 : f32 to vector<256x128xf32>
    %16 = arith.maximumf %14, %15 : vector<256x128xf32>
    %17 = arith.truncf %16 : vector<256x128xf32> to vector<256x128xbf16>
    %c0_12 = arith.constant 0 : index
    %c0_13 = arith.constant 0 : index
    %18 = vector.load %arg6[%c0_12, %c0_13] : memref<128x256xbf16, #tpu.memory_space<vmem>>, vector<128x256xbf16>
    %cst_14 = arith.constant dense<0.000000e+00> : vector<256x256xf32>
    %19 = tpu.matmul %17, %18, %cst_14 {dimension_numbers = #tpu.dot_dimension_numbers<[1], [0], [0], [1], [0, 0, 1, 1], [], []>} : vector<256x128xbf16>, vector<128x256xbf16>, vector<256x256xf32> -> vector<256x256xf32>
    %c0_15 = arith.constant 0 : index
    %c0_16 = arith.constant 0 : index
    %20 = vector.load %arg7[%c0_15, %c0_16] : memref<1x256xf32, #tpu.memory_space<vmem>>, vector<1x256xf32>
    %21 = vector.broadcast %20 : vector<1x256xf32> to vector<256x256xf32>
    %22 = arith.addf %19, %21 : vector<256x256xf32>
    %cst_17 = arith.constant 0.000000e+00 : f32
    %23 = vector.broadcast %cst_17 : f32 to vector<256x256xf32>
    %24 = arith.maximumf %22, %23 : vector<256x256xf32>
    %c0_18 = arith.constant 0 : index
    %c0_19 = arith.constant 0 : index
    %25 = vector.load %arg8[%c0_18, %c0_19] : memref<8x256xbf16, #tpu.memory_space<vmem>>, vector<8x256xbf16>
    %26 = arith.truncf %24 : vector<256x256xf32> to vector<256x256xbf16>
    %cst_20 = arith.constant dense<0.000000e+00> : vector<8x256xf32>
    %27 = tpu.matmul %25, %26, %cst_20 {dimension_numbers = #tpu.dot_dimension_numbers<[1], [1], [0], [0], [0, 0, 1, 0], [], []>} : vector<8x256xbf16>, vector<256x256xbf16>, vector<8x256xf32> -> vector<8x256xf32>
    %28 = vector.extract_strided_slice %27 {offsets = [0, 0], sizes = [1, 256], strides = [1, 1]} : vector<8x256xf32> to vector<1x256xf32>
    %c0_21 = arith.constant 0 : index
    %c0_22 = arith.constant 0 : index
    %29 = vector.load %arg9[%c0_21, %c0_22] : memref<1x1xf32, #tpu.memory_space<vmem>>, vector<1x1xf32>
    %30 = vector.broadcast %29 : vector<1x1xf32> to vector<1x256xf32>
    %31 = arith.addf %28, %30 : vector<1x256xf32>
    %32 = arith.negf %31 : vector<1x256xf32>
    %33 = math.exp %32 : vector<1x256xf32>
    %cst_23 = arith.constant 1.000000e+00 : f32
    %34 = vector.broadcast %cst_23 : f32 to vector<1x256xf32>
    %35 = arith.addf %34, %33 : vector<1x256xf32>
    %36 = arith.divf %34, %35 : vector<1x256xf32>
    %37 = vector.shape_cast %36 : vector<1x256xf32> to vector<1x1x256xf32>
    %c0_24 = arith.constant 0 : index
    %c0_25 = arith.constant 0 : index
    %c0_26 = arith.constant 0 : index
    %38 = vector.load %arg10[%c0_24, %c0_25, %c0_26] : memref<1x1x256xf32, #tpu.memory_space<vmem>>, vector<1x1x256xf32>
    tpu.vector_store %arg10[%c0_24, %c0_25, %c0_26], %37 {strides = array<i32>} : memref<1x1x256xf32, #tpu.memory_space<vmem>>, vector<1x1x256xf32>,
    return
  }
  func.func @transform_0(%arg0: i32) -> (i32, i32) {
    %c0_i32 = arith.constant 0 : i32
    %c0_i32_0 = arith.constant 0 : i32
    return %arg0, %c0_i32 : i32, i32
  }
  func.func @transform_1(%arg0: i32) -> (i32, i32) {
    %c0_i32 = arith.constant 0 : i32
    %c0_i32_0 = arith.constant 0 : i32
    %c0_i32_1 = arith.constant 0 : i32
    return %c0_i32, %c0_i32_0 : i32, i32
  }
  func.func @transform_2(%arg0: i32) -> (i32, i32) {
    %c0_i32 = arith.constant 0 : i32
    %c0_i32_0 = arith.constant 0 : i32
    %c0_i32_1 = arith.constant 0 : i32
    return %c0_i32, %c0_i32_0 : i32, i32
  }
  func.func @transform_3(%arg0: i32) -> (i32, i32) {
    %c0_i32 = arith.constant 0 : i32
    %c0_i32_0 = arith.constant 0 : i32
    %c0_i32_1 = arith.constant 0 : i32
    return %c0_i32, %c0_i32_0 : i32, i32
  }
  func.func @transform_4(%arg0: i32) -> (i32, i32) {
    %c0_i32 = arith.constant 0 : i32
    %c0_i32_0 = arith.constant 0 : i32
    %c0_i32_1 = arith.constant 0 : i32
    return %c0_i32, %c0_i32_0 : i32, i32
  }
  func.func @transform_5(%arg0: i32) -> (i32, i32) {
    %c0_i32 = arith.constant 0 : i32
    %c0_i32_0 = arith.constant 0 : i32
    %c0_i32_1 = arith.constant 0 : i32
    return %c0_i32, %c0_i32_0 : i32, i32
  }
  func.func @transform_6(%arg0: i32) -> (i32, i32) {
    %c0_i32 = arith.constant 0 : i32
    %c0_i32_0 = arith.constant 0 : i32
    %c0_i32_1 = arith.constant 0 : i32
    return %c0_i32, %c0_i32_0 : i32, i32
  }
  func.func @transform_7(%arg0: i32) -> (i32, i32) {
    %c0_i32 = arith.constant 0 : i32
    %c0_i32_0 = arith.constant 0 : i32
    %c0_i32_1 = arith.constant 0 : i32
    return %c0_i32, %c0_i32_0 : i32, i32
  }
  func.func @transform_8(%arg0: i32) -> (i32, i32) {
    %c0_i32 = arith.constant 0 : i32
    %c0_i32_0 = arith.constant 0 : i32
    %c0_i32_1 = arith.constant 0 : i32
    return %c0_i32, %c0_i32_0 : i32, i32
  }
  func.func @transform_9(%arg0: i32) -> (i32, i32, i32) {
    %c0_i32 = arith.constant 0 : i32
    %c0_i32_0 = arith.constant 0 : i32
    %c0_i32_1 = arith.constant 0 : i32
    return %arg0, %c0_i32, %c0_i32_0 : i32, i32, i32
  }
}

</mosaic_0001>

<bundles_post_ra>
// kernel: _lambda_.1
= control target key start
LH: loop header
LB: loop body
LE: loop exit
PB: predicated region body
PF: predicated region fallthrough
CT: control target
= control target key end

     0   :  { %v1530_v1 = vmov 0   ;;  %vm119_vm0 = vcmask 261120   ;;  %s2081_s1 = inlined_call_operand.vmem [shape: bf16[32,256], index: 1, kind: input, shape index: {}]   ;;  %s2082_s0 = inlined_call_operand.vmem [shape: f32[256,32], index: 0, kind: input, shape index: {}]   ;;  %s2083_s3 = inlined_call_operand.vmem [shape: bf16[256,128], index: 3, kind: input, shape index: {}]   ;;  %s2084_s2 = inlined_call_operand.vmem [shape: f32[1,256], index: 2, kind: input, shape index: {}]   ;;  %s2085_s5 = inlined_call_operand.vmem [shape: bf16[128,256], index: 5, kind: input, shape index: {}]   ;;  %s2086_s4 = inlined_call_operand.vmem [shape: f32[1,128], index: 4, kind: input, shape index: {}]   ;;  %s2087_s6 = inlined_call_operand.vmem [shape: f32[1,256], index: 6, kind: input, shape index: {}]   ;;  %s2088_s7 = inlined_call_operand.vmem [shape: bf16[8,256], index: 7, kind: input, shape index: {}]   ;;  %s2089_s8 = inlined_call_operand.<no memory space> [shape: f32[1,1], index: 8, kind: input, shape index: {}]   ;;  %s2090_s9 = inlined_call_operand.vmem [shape: f32[1,1,256], index: 9, kind: output, shape index: {}]  }
   0x1   :  { %v1474_v0 = vld [vmem:[%s2081_s1 + $0x4] ss:$8 sps:$4 sm:$0xff]   ;;  %200 = vmatprep.mubr.bf16.mxu0 %v1530_v1  ;;  %290 = vmatprep.mubr.bf16.mxu1 %v1530_v1  ;;  %v1476_v2 = vld [vmem:[%s2081_s1] ss:$8 sps:$4 sm:$0xff]   ;;  %v1477_v3 = vld [vmem:[%s2081_s1 + $0x14] ss:$8 sps:$4 sm:$0xff]  }
   0x2   :  { %1473 = vset.pattern.permute.xlu0 %v1530_v1  ;;  %168 = vmatprep.subr.bf16.mxu0 %v1474_v0  ;;  %v1479_v4 = vld [vmem:[%s2081_s1 + $0x10] ss:$8 sps:$4 sm:$0xff]   ;;  %v35_v5 = vld [vmem:[%s2082_s0] sm:$0xff]  ;;  %v36_v6 = vld [vmem:[%s2082_s0 + $0x8] sm:$0xff] }
   0x3   :  { %1467 = vmatprep.subr.bf16.mxu1 %v1474_v0  ;;  %169 = vmatpush1.bf16.msra.mxu0 %v1476_v2  ;;  %v67_v7 = vpack.c.bf16 %v36_v6, %v35_v5  ;;  %v53_v8 = vld [vmem:[%s2082_s0 + $0x90] sm:$0xff]  ;;  %v54_v9 = vld [vmem:[%s2082_s0 + $0x98] sm:$0xff]  ;;  %v55_v13 = vld [vmem:[%s2082_s0 + $0xa0] sm:$0xff]  ;;  %v89_v6 = vlaneseq }
   0x4   :  { %1469 = vmatpush1.bf16.msra.mxu1 %v1476_v2  ;;  %170 = vmatprep.subr.bf16.mxu0 %v1477_v3  ;;  %v76_v10 = vpack.c.bf16 %v54_v9, %v53_v8  ;;  %v37_v11 = vld [vmem:[%s2082_s0 + $0x10] sm:$0xff]  ;;  %v38_v12 = vld [vmem:[%s2082_s0 + $0x18] sm:$0xff]  ;;  %v56_v14 = vld [vmem:[%s2082_s0 + $0xa8] sm:$0xff] }
   0x5   :  { %1468 = vmatprep.subr.bf16.mxu1 %v1477_v3  ;;  %v68_v15 = vpack.c.bf16 %v38_v12, %v37_v11  ;;  %v1480_v16 = vld [vmem:[%s2083_s3 + $0x40] sm:$0xff]   ;;  %v77_v18 = vpack.c.bf16 %v56_v14, %v55_v13  ;;  %v1482_v19 = vld [vmem:[%s2083_s3 + $0x48] sm:$0xff]   ;;  %v1484_v23 = vld [vmem:[%s2083_s3 + $0x50] sm:$0xff]   ;;  %vm1291_vm1 = vcmp.lt.s32.totalorder %v89_v6, 256 }
   0x6   :  { %v1481_v17 = vld [vmem:[%s2083_s3] sm:$0xff]   ;;  %v40_v21 = vld [vmem:[%s2082_s0 + $0x28] sm:$0xff]  ;;  %v57_v24 = vld [vmem:[%s2082_s0 + $0xb0] sm:$0xff] }
   0x7   :  { %171 = vmatpush1.bf16.msra.mxu0 %v1479_v4  ;;  %v39_v20 = vld [vmem:[%s2082_s0 + $0x20] sm:$0xff]  ;;  %v1483_v22 = vld [vmem:[%s2083_s3 + $0x8] sm:$0xff]   ;;  %v58_v25 = vld [vmem:[%s2082_s0 + $0xb8] sm:$0xff] }
   0x8   :  { %1470 = vmatpush1.bf16.msra.mxu1 %v1479_v4  ;;  %v1485_v26 = vld [vmem:[%s2083_s3 + $0x10] sm:$0xff]   ;;  %v69_v27 = vpack.c.bf16 %v40_v21, %v39_v20  ;;  %v1486_v28 = vld [vmem:[%s2083_s3 + $0x58] sm:$0xff]   ;;  %v78_v29 = vpack.c.bf16 %v58_v25, %v57_v24  ;;  %v1488_v31 = vld [vmem:[%s2083_s3 + $0x60] sm:$0xff]  }
   0x9   :  { %1355 = vmatprep.subr.bf16.mxu1 %v1480_v16  ;;  %v1487_v30 = vld [vmem:[%s2083_s3 + $0x18] sm:$0xff]   ;;  %v41_v32 = vld [vmem:[%s2082_s0 + $0x30] sm:$0xff]  ;;  %v59_v34 = vld [vmem:[%s2082_s0 + $0xc0] sm:$0xff] }
   0xa   :  { %1302 = vmatmul.mubr.msk.bf16.vlgmr.msra.gmra.mrb[0].mxu0 %vm119_vm0, %v67_v7  ;;  %v42_v33 = vld [vmem:[%s2082_s0 + $0x38] sm:$0xff]  ;;  %v60_v35 = vld [vmem:[%s2082_s0 + $0xc8] sm:$0xff]  ;;  %v1489_v36 = vld [vmem:[%s2083_s3 + $0x20] sm:$0xff]   ;;  %v1773_v7 = vshrl.u32 %v89_v6, 7 }
   0xb   :  { %210 = vmatprep.mubr.bf16.mxu0 %v1530_v1  ;;  %1311 = vmatmul.mubr.msk.bf16.vlgmr.msra.gmra.mrb[0].mxu1 %vm119_vm0, %v76_v10  ;;  %v70_v37 = vpack.c.bf16 %v42_v33, %v41_v32  ;;  %v1490_v38 = vld [vmem:[%s2083_s3 + $0x68] sm:$0xff]   ;;  %v79_v39 = vpack.c.bf16 %v60_v35, %v59_v34  ;;  %v1492_v41 = vld [vmem:[%s2083_s3 + $0x70] sm:$0xff]   ;;  %v43_v42 = vld [vmem:[%s2082_s0 + $0x40] sm:$0xff] }
   0xc   :  { %300 = vmatprep.mubr.bf16.mxu1 %v1530_v1  ;;  %1356 = vmatpush3.bf16.msra.mxu1 %v1481_v17  ;;  %v1491_v40 = vld [vmem:[%s2083_s3 + $0x28] sm:$0xff]   ;;  %v61_v44 = vld [vmem:[%s2082_s0 + $0xd0] sm:$0xff]  ;;  %v62_v45 = vld [vmem:[%s2082_s0 + $0xd8] sm:$0xff]  ;;  %v1776_v8 = vsub.s32 0, %v1773_v7  ;;  %v95_v10 = vsub.s32 1, %v1773_v7 }
   0xd   :  { %1357 = vmatprep.subr.bf16.mxu1 %v1482_v19  ;;  %v44_v43 = vld [vmem:[%s2082_s0 + $0x48] sm:$0xff]  ;;  %v1493_v46 = vld [vmem:[%s2083_s3 + $0x30] sm:$0xff]   ;;  %v80_v48 = vpack.c.bf16 %v62_v45, %v61_v44  ;;  %v46_v50 = vld [vmem:[%s2082_s0 + $0x58] sm:$0xff] }
   0xe   :  { %v71_v47 = vpack.c.bf16 %v44_v43, %v43_v42  ;;  %v45_v49 = vld [vmem:[%s2082_s0 + $0x50] sm:$0xff]  ;;  %v63_v51 = vld [vmem:[%s2082_s0 + $0xe0] sm:$0xff]  ;;  %v64_v52 = vld [vmem:[%s2082_s0 + $0xe8] sm:$0xff] }
   0xf   :  { %v72_v53 = vpack.c.bf16 %v46_v50, %v45_v49  ;;  %v81_v54 = vpack.c.bf16 %v64_v52, %v63_v51  ;;  %v47_v55 = vld [vmem:[%s2082_s0 + $0x60] sm:$0xff]  ;;  %v48_v56 = vld [vmem:[%s2082_s0 + $0x68] sm:$0xff]  ;;  %v65_v57 = vld [vmem:[%s2082_s0 + $0xf0] sm:$0xff] }
  0x10   :  { %1358 = vmatpush3.bf16.msra.mxu1 %v1483_v22  ;;  %v66_v58 = vld [vmem:[%s2082_s0 + $0xf8] sm:$0xff]  ;;  %v73_v59 = vpack.c.bf16 %v48_v56, %v47_v55  ;;  %v49_v61 = vld [vmem:[%s2082_s0 + $0x70] sm:$0xff]  ;;  %v51_v0 = vld [vmem:[%s2082_s0 + $0x80] sm:$0xff] }
  0x11   :  { %1359 = vmatprep.subr.bf16.mxu1 %v1484_v23  ;;  %v82_v60 = vpack.c.bf16 %v66_v58, %v65_v57  ;;  %v50_v62 = vld [vmem:[%s2082_s0 + $0x78] sm:$0xff]  ;;  %v52_v2 = vld [vmem:[%s2082_s0 + $0x88] sm:$0xff]  ;;  %v87_v9 = vld [vmem:[%s2084_s2] sm:$0x3] }
  0x12   :  { %1303 = vmatmul.mubr.msk.bf16.gmra.mrb[4].mxu0 %vm119_vm0, %v68_v15  ;;  %v74_v63 = vpack.c.bf16 %v50_v62, %v49_v61  ;;  %v75_v3 = vpack.c.bf16 %v52_v2, %v51_v0  ;;  %v1494_v4 = vld [vmem:[%s2083_s3 + $0x78] sm:$0xff]   ;;  %v1783_v11 = vrot.slane %v87_v9, %v1776_v8  ;;  %v1787_v12 = vrot.slane %v87_v9, %v95_v10  ;;  %v1498_v32 = vld [vmem:[%s2085_s5 + $0x4] ss:$8 sps:$4 sm:$0xff]  }
  0x13   :  { %220 = vmatprep.mubr.bf16.mxu0 %v1530_v1  ;;  %1312 = vmatmul.mubr.msk.bf16.gmra.mrb[4].mxu1 %vm119_vm0, %v77_v18  ;;  %v1495_v5 = vld [vmem:[%s2083_s3 + $0x38] sm:$0xff]  }
  0x14   :  { %310 = vmatprep.mubr.bf16.mxu1 %v1530_v1  ;;  %1360 = vmatpush3.bf16.msra.mxu1 %v1485_v26  ;;  %v1499_v43 = vld [vmem:[%s2085_s5 + $0x10] ss:$8 sps:$4 sm:$0xff]   ;;  %v1507_v61 = vld [vmem:[%s2085_s5 + $0x34] ss:$8 sps:$4 sm:$0xff]  }
  0x15   :  { %1361 = vmatprep.subr.bf16.mxu1 %v1486_v28  ;;  %909 = vmatprep.subr.bf16.mxu0 %v1498_v32 }
  0x18   :  { %1362 = vmatpush3.bf16.msra.mxu1 %v1487_v30 }
  0x19   :  { %1363 = vmatprep.subr.bf16.mxu1 %v1488_v31 }
  0x1a   :  { %1304 = vmatmul.mubr.msk.bf16.gmra.mrb[8].mxu0 %vm119_vm0, %v69_v27  ;;  %v1496_v27 = vld [vmem:[%s2085_s5] ss:$8 sps:$4 sm:$0xff]  }
  0x1b   :  { %230 = vmatprep.mubr.bf16.mxu0 %v1530_v1  ;;  %1313 = vmatmul.mubr.msk.bf16.gmra.mrb[8].mxu1 %vm119_vm0, %v78_v29 }
  0x1c   :  { %320 = vmatprep.mubr.bf16.mxu1 %v1530_v1  ;;  %1364 = vmatpush3.bf16.msra.mxu1 %v1489_v36 }
  0x1d   :  { %1365 = vmatprep.subr.bf16.mxu1 %v1490_v38  ;;  %910 = vmatpush1.bf16.msra.mxu0 %v1496_v27 }
  0x20   :  { %1366 = vmatpush3.bf16.msra.mxu1 %v1491_v40 }
  0x21   :  { %1367 = vmatprep.subr.bf16.mxu1 %v1492_v41 }
  0x22   :  { %1305 = vmatmul.mubr.msk.bf16.gmra.mrb[12].mxu0 %vm119_vm0, %v70_v37 }
  0x23   :  { %240 = vmatprep.mubr.bf16.mxu0 %v1530_v1  ;;  %1314 = vmatmul.mubr.msk.bf16.gmra.mrb[12].mxu1 %vm119_vm0, %v79_v39  ;;  %v1501_v39 = vld [vmem:[%s2085_s5 + $0x14] ss:$8 sps:$4 sm:$0xff]  }
  0x24   :  { %330 = vmatprep.mubr.bf16.mxu1 %v1530_v1  ;;  %1368 = vmatpush3.bf16.msra.mxu1 %v1493_v46 }
  0x25   :  { %1369 = vmatprep.subr.bf16.mxu1 %v1494_v4  ;;  %911 = vmatprep.subr.bf16.mxu0 %v1501_v39 }
  0x26   :  { %912 = vmatpush1.bf16.msra.mxu0 %v1499_v43 }
  0x28   :  { %1370 = vmatpush3.bf16.msra.mxu1 %v1495_v5 }
  0x2a   :  { %1306 = vmatmul.mubr.msk.bf16.gmra.mrb[16].mxu0 %vm119_vm0, %v71_v47  ;;  %v1504_v47 = vld [vmem:[%s2085_s5 + $0x24] ss:$8 sps:$4 sm:$0xff]  }
  0x2b   :  { %250 = vmatprep.mubr.bf16.mxu0 %v1530_v1  ;;  %1315 = vmatmul.mubr.msk.bf16.gmra.mrb[16].mxu1 %vm119_vm0, %v80_v48 }
  0x2c   :  { %340 = vmatprep.mubr.bf16.mxu1 %v1530_v1  ;;  %913 = vmatprep.subr.bf16.mxu0 %v1504_v47 }
  0x32   :  { %1307 = vmatmul.mubr.msk.bf16.gmra.mrb[20].mxu0 %vm119_vm0, %v72_v53 }
  0x33   :  { %260 = vmatprep.mubr.bf16.mxu0 %v1530_v1  ;;  %1316 = vmatmul.mubr.msk.bf16.gmra.mrb[20].mxu1 %vm119_vm0, %v81_v54 }
  0x34   :  { %350 = vmatprep.mubr.bf16.mxu1 %v1530_v1 }
  0x3a   :  { %1308 = vmatmul.mubr.msk.bf16.gmra.mrb[24].mxu0 %vm119_vm0, %v73_v59 }
  0x3b   :  { %270 = vmatprep.mubr.bf16.mxu0 %v1530_v1  ;;  %1317 = vmatmul.mubr.msk.bf16.gmra.mrb[24].mxu1 %vm119_vm0, %v82_v60  ;;  %v1502_v60 = vld [vmem:[%s2085_s5 + $0x20] ss:$8 sps:$4 sm:$0xff]  }
  0x3c   :  { %914 = vmatpush1.bf16.msra.mxu0 %v1502_v60 }
  0x3d   :  { %915 = vmatprep.subr.bf16.mxu0 %v1507_v61 }
  0x42   :  { %1309 = vmatmul.mubr.msk.bf16.gmra.mrb[28].mxu0 %vm119_vm0, %v74_v63 }
  0x43   :  { %280 = vmatprep.mubr.bf16.mxu0 %v1530_v1 }
  0x4a   :  { %1310 = vmatmul.mubr.msk.bf16.gmra.mrb[32].mxu0 %vm119_vm0, %v75_v3 }
  0x4b   :  { %941 = vmatprep.mubr.bf16.mxu0 %v1530_v1 }
  0xdd   :  { %v202_v13 = vpop.f32.mrb[0].mxu0 }
  0xde   :  { %v203_v14 = vadd.f32 %v202_v13, %v1783_v11  ;;  %v204_v15 = vpop.f32.mrb[1].mxu0  ;;  %v292_v18 = vpop.f32.mrb[0].mxu1 }
  0xdf   :  { %v205_v16 = vadd.f32 %v204_v15, %v1787_v12  ;;  %v206_v17 = vpop.f32.mrb[2].mxu0  ;;  %v293_v21 = vadd.f32 %v292_v18, %v1783_v11  ;;  %v294_v22 = vpop.f32.mrb[1].mxu1  ;;  %v1505_v18 = vld [vmem:[%s2085_s5 + $0x30] ss:$8 sps:$4 sm:$0xff]  }
  0xe0   :  { %v207_v19 = vadd.f32 %v206_v17, %v1783_v11  ;;  %v208_v20 = vpop.f32.mrb[3].mxu0  ;;  %v361_v23 = vmax.f32 %v203_v14, 0.0  ;;  %v295_v25 = vadd.f32 %v294_v22, %v1787_v12  ;;  %v296_v26 = vpop.f32.mrb[2].mxu1  ;;  %v1510_v22 = vld [vmem:[%s2085_s5 + $0x44] ss:$8 sps:$4 sm:$0xff]   ;;  %916 = vmatpush1.bf16.msra.mxu0 %v1505_v18 }
  0xe1   :  { %v209_v24 = vadd.f32 %v208_v20, %v1787_v12  ;;  %v397_v29 = vmax.f32 %v293_v21, 0.0  ;;  %v297_v30 = vadd.f32 %v296_v26, %v1783_v11  ;;  %v298_v31 = vpop.f32.mrb[3].mxu1  ;;  %v362_v33 = vmax.f32 %v205_v16, 0.0  ;;  %917 = vmatprep.subr.bf16.mxu0 %v1510_v22 }
  0xe2   :  { %v363_v28 = vmax.f32 %v207_v19, 0.0  ;;  %v398_v35 = vmax.f32 %v295_v25, 0.0  ;;  %v299_v36 = vadd.f32 %v298_v31, %v1787_v12 }
  0xe3   :  { %v364_v34 = vmax.f32 %v209_v24, 0.0  ;;  %v399_v38 = vmax.f32 %v297_v30, 0.0 }
  0xe4   :  { %v425_v37 = vpack.c.bf16 %v363_v28, %v361_v23  ;;  %v400_v42 = vmax.f32 %v299_v36, 0.0 }
  0xe5   :  { %v426_v40 = vpack.c.bf16 %v364_v34, %v362_v33  ;;  %v212_v41 = vpop.f32.mrb[4].mxu0  ;;  %v1810_v46 = vpack.c.bf16 %v399_v38, %v397_v29  ;;  %v1508_v34 = vld [vmem:[%s2085_s5 + $0x40] ss:$8 sps:$4 sm:$0xff]  }
  0xe6   :  { %v213_v44 = vadd.f32 %v212_v41, %v1783_v11  ;;  %v214_v45 = vpop.f32.mrb[5].mxu0  ;;  %v1816_v50 = vpack.c.bf16 %v400_v42, %v398_v35  ;;  %v302_v51 = vpop.f32.mrb[4].mxu1  ;;  %918 = vmatpush1.bf16.msra.mxu0 %v1508_v34 }
  0xe7   :  { %v215_v48 = vadd.f32 %v214_v45, %v1787_v12  ;;  %v216_v49 = vpop.f32.mrb[6].mxu0  ;;  %624 = vmatprep.mubr.bf16.mxu1 %v426_v40  ;;  %v303_v54 = vadd.f32 %v302_v51, %v1783_v11  ;;  %v304_v55 = vpop.f32.mrb[5].mxu1  ;;  %v1513_v40 = vld [vmem:[%s2085_s5 + $0x54] ss:$8 sps:$4 sm:$0xff]  }
  0xe8   :  { %v217_v52 = vadd.f32 %v216_v49, %v1783_v11  ;;  %v218_v53 = vpop.f32.mrb[7].mxu0  ;;  %625 = vmatmul.mubr.bf16.vlgmr.msra.gmra.mrb[28].mxu1 %v425_v37  ;;  %v365_v56 = vmax.f32 %v213_v44, 0.0  ;;  %v305_v58 = vadd.f32 %v304_v55, %v1787_v12  ;;  %v306_v59 = vpop.f32.mrb[6].mxu1  ;;  %919 = vmatprep.subr.bf16.mxu0 %v1513_v40 }
  0xe9   :  { %v219_v57 = vadd.f32 %v218_v53, %v1787_v12  ;;  %v401_v63 = vmax.f32 %v303_v54, 0.0  ;;  %v307_v0 = vadd.f32 %v306_v59, %v1783_v11  ;;  %v308_v2 = vpop.f32.mrb[7].mxu1  ;;  %v366_v3 = vmax.f32 %v215_v48, 0.0 }
  0xea   :  { %v367_v62 = vmax.f32 %v217_v52, 0.0  ;;  %v402_v5 = vmax.f32 %v305_v58, 0.0  ;;  %v309_v9 = vadd.f32 %v308_v2, %v1787_v12  ;;  %v1511_v52 = vld [vmem:[%s2085_s5 + $0x50] ss:$8 sps:$4 sm:$0xff]  }
  0xeb   :  { %v368_v4 = vmax.f32 %v219_v57, 0.0  ;;  %v403_v14 = vmax.f32 %v307_v0, 0.0  ;;  %920 = vmatpush1.bf16.msra.mxu0 %v1511_v52 }
  0xec   :  { %v427_v13 = vpack.c.bf16 %v367_v62, %v365_v56  ;;  %v404_v17 = vmax.f32 %v309_v9, 0.0  ;;  %v1516_v56 = vld [vmem:[%s2085_s5 + $0x64] ss:$8 sps:$4 sm:$0xff]  }
  0xed   :  { %v428_v15 = vpack.c.bf16 %v368_v4, %v366_v3  ;;  %v222_v16 = vpop.f32.mrb[8].mxu0  ;;  %v1834_v21 = vpack.c.bf16 %v403_v14, %v401_v63  ;;  %921 = vmatprep.subr.bf16.mxu0 %v1516_v56 }
  0xee   :  { %v223_v19 = vadd.f32 %v222_v16, %v1783_v11  ;;  %v224_v20 = vpop.f32.mrb[9].mxu0  ;;  %v1840_v25 = vpack.c.bf16 %v404_v17, %v402_v5  ;;  %v312_v26 = vpop.f32.mrb[8].mxu1  ;;  %v1514_v5 = vld [vmem:[%s2085_s5 + $0x60] ss:$8 sps:$4 sm:$0xff]  }
  0xef   :  { %v225_v23 = vadd.f32 %v224_v20, %v1787_v12  ;;  %v226_v24 = vpop.f32.mrb[10].mxu0  ;;  %632 = vmatprep.mubr.bf16.mxu1 %v428_v15  ;;  %v313_v29 = vadd.f32 %v312_v26, %v1783_v11  ;;  %v314_v30 = vpop.f32.mrb[9].mxu1  ;;  %922 = vmatpush1.bf16.msra.mxu0 %v1514_v5 }
  0xf0   :  { %v227_v27 = vadd.f32 %v226_v24, %v1783_v11  ;;  %v228_v28 = vpop.f32.mrb[11].mxu0  ;;  %633 = vmatmul.mubr.bf16.gmra.mrb[32].mxu1 %v427_v13  ;;  %v315_v32 = vadd.f32 %v314_v30, %v1787_v12  ;;  %v316_v33 = vpop.f32.mrb[10].mxu1  ;;  %v369_v35 = vmax.f32 %v223_v19, 0.0 }
  0xf1   :  { %v229_v31 = vadd.f32 %v228_v28, %v1787_v12  ;;  %v405_v37 = vmax.f32 %v313_v29, 0.0  ;;  %v317_v38 = vadd.f32 %v316_v33, %v1783_v11  ;;  %v318_v39 = vpop.f32.mrb[11].mxu1  ;;  %v370_v41 = vmax.f32 %v225_v23, 0.0 }
  0xf2   :  { %v371_v36 = vmax.f32 %v227_v27, 0.0  ;;  %v406_v43 = vmax.f32 %v315_v32, 0.0  ;;  %v319_v44 = vadd.f32 %v318_v39, %v1787_v12 }
  0xf3   :  { %v372_v42 = vmax.f32 %v229_v31, 0.0  ;;  %v407_v47 = vmax.f32 %v317_v38, 0.0 }
  0xf4   :  { %v429_v45 = vpack.c.bf16 %v371_v36, %v369_v35  ;;  %v408_v51 = vmax.f32 %v319_v44, 0.0 }
  0xf5   :  { %v430_v48 = vpack.c.bf16 %v372_v42, %v370_v41  ;;  %v232_v49 = vpop.f32.mrb[12].mxu0  ;;  %v1858_v55 = vpack.c.bf16 %v407_v47, %v405_v37 }
  0xf6   :  { %v233_v53 = vadd.f32 %v232_v49, %v1783_v11  ;;  %v234_v54 = vpop.f32.mrb[13].mxu0  ;;  %v1864_v59 = vpack.c.bf16 %v408_v51, %v406_v43  ;;  %v322_v60 = vpop.f32.mrb[12].mxu1 }
  0xf7   :  { %v235_v57 = vadd.f32 %v234_v54, %v1787_v12  ;;  %v236_v58 = vpop.f32.mrb[14].mxu0  ;;  %640 = vmatprep.mubr.bf16.mxu1 %v430_v48  ;;  %v323_v63 = vadd.f32 %v322_v60, %v1783_v11  ;;  %v324_v0 = vpop.f32.mrb[13].mxu1 }
  0xf8   :  { %v237_v61 = vadd.f32 %v236_v58, %v1783_v11  ;;  %v238_v62 = vpop.f32.mrb[15].mxu0  ;;  %641 = vmatmul.mubr.bf16.gmra.mrb[36].mxu1 %v429_v45  ;;  %v325_v3 = vadd.f32 %v324_v0, %v1787_v12  ;;  %v326_v4 = vpop.f32.mrb[14].mxu1  ;;  %v373_v9 = vmax.f32 %v233_v53, 0.0 }
  0xf9   :  { %v239_v2 = vadd.f32 %v238_v62, %v1787_v12  ;;  %v409_v14 = vmax.f32 %v323_v63, 0.0  ;;  %v327_v15 = vadd.f32 %v326_v4, %v1783_v11  ;;  %v328_v16 = vpop.f32.mrb[15].mxu1  ;;  %v374_v17 = vmax.f32 %v235_v57, 0.0 }
  0xfa   :  { %v375_v13 = vmax.f32 %v237_v61, 0.0  ;;  %v410_v19 = vmax.f32 %v325_v3, 0.0  ;;  %v329_v20 = vadd.f32 %v328_v16, %v1787_v12 }
  0xfb   :  { %v376_v18 = vmax.f32 %v239_v2, 0.0  ;;  %v411_v23 = vmax.f32 %v327_v15, 0.0 }
  0xfc   :  { %v431_v22 = vpack.c.bf16 %v375_v13, %v373_v9  ;;  %v412_v27 = vmax.f32 %v329_v20, 0.0 }
  0xfd   :  { %v432_v24 = vpack.c.bf16 %v376_v18, %v374_v17  ;;  %v242_v26 = vpop.f32.mrb[16].mxu0  ;;  %v1876_v30 = vpack.c.bf16 %v411_v23, %v409_v14 }
  0xfe   :  { %v243_v28 = vadd.f32 %v242_v26, %v1783_v11  ;;  %v244_v29 = vpop.f32.mrb[17].mxu0  ;;  %v1879_v33 = vpack.c.bf16 %v412_v27, %v410_v19  ;;  %v332_v34 = vpop.f32.mrb[16].mxu1 }
  0xff   :  { %v245_v31 = vadd.f32 %v244_v29, %v1787_v12  ;;  %v246_v32 = vpop.f32.mrb[18].mxu0  ;;  %648 = vmatprep.mubr.bf16.mxu1 %v432_v24  ;;  %v333_v37 = vadd.f32 %v332_v34, %v1783_v11  ;;  %v334_v38 = vpop.f32.mrb[17].mxu1 }
 0x100   :  { %v247_v35 = vadd.f32 %v246_v32, %v1783_v11  ;;  %v248_v36 = vpop.f32.mrb[19].mxu0  ;;  %649 = vmatmul.mubr.bf16.gmra.mrb[40].mxu1 %v431_v22  ;;  %v335_v40 = vadd.f32 %v334_v38, %v1787_v12  ;;  %v336_v41 = vpop.f32.mrb[18].mxu1  ;;  %v377_v42 = vmax.f32 %v243_v28, 0.0 }
 0x101   :  { %v249_v39 = vadd.f32 %v248_v36, %v1787_v12  ;;  %v413_v44 = vmax.f32 %v333_v37, 0.0  ;;  %v337_v45 = vadd.f32 %v336_v41, %v1783_v11  ;;  %v338_v47 = vpop.f32.mrb[19].mxu1  ;;  %v378_v48 = vmax.f32 %v245_v31, 0.0 }
 0x102   :  { %v379_v43 = vmax.f32 %v247_v35, 0.0  ;;  %v414_v51 = vmax.f32 %v335_v40, 0.0  ;;  %v339_v52 = vadd.f32 %v338_v47, %v1787_v12 }
 0x103   :  { %v380_v49 = vmax.f32 %v249_v39, 0.0  ;;  %v415_v54 = vmax.f32 %v337_v45, 0.0 }
 0x104   :  { %v433_v53 = vpack.c.bf16 %v379_v43, %v377_v42  ;;  %v416_v58 = vmax.f32 %v339_v52, 0.0 }
 0x105   :  { %v434_v56 = vpack.c.bf16 %v380_v49, %v378_v48  ;;  %v252_v57 = vpop.f32.mrb[20].mxu0  ;;  %v1888_v62 = vpack.c.bf16 %v415_v54, %v413_v44 }
 0x106   :  { %v253_v60 = vadd.f32 %v252_v57, %v1783_v11  ;;  %v254_v61 = vpop.f32.mrb[21].mxu0  ;;  %v1891_v2 = vpack.c.bf16 %v416_v58, %v414_v51  ;;  %v342_v3 = vpop.f32.mrb[20].mxu1 }
 0x107   :  { %v255_v63 = vadd.f32 %v254_v61, %v1787_v12  ;;  %v256_v0 = vpop.f32.mrb[22].mxu0  ;;  %656 = vmatprep.mubr.bf16.mxu1 %v434_v56  ;;  %v343_v9 = vadd.f32 %v342_v3, %v1783_v11  ;;  %v344_v13 = vpop.f32.mrb[21].mxu1 }
 0x108   :  { %v257_v4 = vadd.f32 %v256_v0, %v1783_v11  ;;  %v258_v5 = vpop.f32.mrb[23].mxu0  ;;  %657 = vmatmul.mubr.bf16.gmra.mrb[44].mxu1 %v433_v53  ;;  %v345_v15 = vadd.f32 %v344_v13, %v1787_v12  ;;  %v346_v16 = vpop.f32.mrb[22].mxu1  ;;  %v381_v17 = vmax.f32 %v253_v60, 0.0 }
 0x109   :  { %v259_v14 = vadd.f32 %v258_v5, %v1787_v12  ;;  %v417_v19 = vmax.f32 %v343_v9, 0.0  ;;  %v347_v20 = vadd.f32 %v346_v16, %v1783_v11  ;;  %v348_v22 = vpop.f32.mrb[23].mxu1  ;;  %v382_v23 = vmax.f32 %v255_v63, 0.0 }
 0x10a   :  { %v383_v18 = vmax.f32 %v257_v4, 0.0  ;;  %v418_v26 = vmax.f32 %v345_v15, 0.0  ;;  %v349_v27 = vadd.f32 %v348_v22, %v1787_v12 }
 0x10b   :  { %v384_v24 = vmax.f32 %v259_v14, 0.0  ;;  %v419_v29 = vmax.f32 %v347_v20, 0.0 }
 0x10c   :  { %v435_v28 = vpack.c.bf16 %v383_v18, %v381_v17  ;;  %v420_v34 = vmax.f32 %v349_v27, 0.0 }
 0x10d   :  { %v436_v31 = vpack.c.bf16 %v384_v24, %v382_v23  ;;  %v262_v32 = vpop.f32.mrb[24].mxu0  ;;  %v1900_v37 = vpack.c.bf16 %v419_v29, %v417_v19 }
 0x10e   :  { %v263_v35 = vadd.f32 %v262_v32, %v1783_v11  ;;  %v264_v36 = vpop.f32.mrb[25].mxu0  ;;  %v1903_v40 = vpack.c.bf16 %v420_v34, %v418_v26  ;;  %v352_v41 = vpop.f32.mrb[24].mxu1 }
 0x10f   :  { %v265_v38 = vadd.f32 %v264_v36, %v1787_v12  ;;  %v266_v39 = vpop.f32.mrb[26].mxu0  ;;  %664 = vmatprep.mubr.bf16.mxu1 %v436_v31  ;;  %v353_v44 = vadd.f32 %v352_v41, %v1783_v11  ;;  %v354_v45 = vpop.f32.mrb[25].mxu1 }
 0x110   :  { %v267_v42 = vadd.f32 %v266_v39, %v1783_v11  ;;  %v268_v43 = vpop.f32.mrb[27].mxu0  ;;  %665 = vmatmul.mubr.bf16.gmra.mrb[48].mxu1 %v435_v28  ;;  %v355_v48 = vadd.f32 %v354_v45, %v1787_v12  ;;  %v356_v49 = vpop.f32.mrb[26].mxu1  ;;  %v385_v51 = vmax.f32 %v263_v35, 0.0 }
 0x111   :  { %v269_v47 = vadd.f32 %v268_v43, %v1787_v12  ;;  %v421_v53 = vmax.f32 %v353_v44, 0.0  ;;  %v357_v54 = vadd.f32 %v356_v49, %v1783_v11  ;;  %v358_v56 = vpop.f32.mrb[27].mxu1  ;;  %v386_v57 = vmax.f32 %v265_v38, 0.0 }
 0x112   :  { %v387_v52 = vmax.f32 %v267_v42, 0.0  ;;  %v422_v60 = vmax.f32 %v355_v48, 0.0  ;;  %v359_v61 = vadd.f32 %v358_v56, %v1787_v12 }
 0x113   :  { %v388_v58 = vmax.f32 %v269_v47, 0.0  ;;  %v423_v0 = vmax.f32 %v357_v54, 0.0 }
 0x114   :  { %v437_v63 = vpack.c.bf16 %v387_v52, %v385_v51  ;;  %v424_v5 = vmax.f32 %v359_v61, 0.0 }
 0x115   :  { %v438_v3 = vpack.c.bf16 %v388_v58, %v386_v57  ;;  %v272_v4 = vpop.f32.mrb[28].mxu0  ;;  %v455_v14 = vpack.c.bf16 %v423_v0, %v421_v53 }
 0x116   :  { %v273_v9 = vadd.f32 %v272_v4, %v1783_v11  ;;  %v274_v13 = vpop.f32.mrb[29].mxu0  ;;  %v456_v17 = vpack.c.bf16 %v424_v5, %v422_v60 }
 0x117   :  { %v275_v15 = vadd.f32 %v274_v13, %v1787_v12  ;;  %v276_v16 = vpop.f32.mrb[30].mxu0  ;;  %672 = vmatprep.mubr.bf16.mxu1 %v438_v3 }
 0x118   :  { %v277_v18 = vadd.f32 %v276_v16, %v1783_v11  ;;  %v278_v19 = vpop.f32.mrb[31].mxu0  ;;  %673 = vmatmul.mubr.bf16.gmra.mrb[52].mxu1 %v437_v63  ;;  %v389_v22 = vmax.f32 %v273_v9, 0.0 }
 0x119   :  { %v279_v20 = vadd.f32 %v278_v19, %v1787_v12  ;;  %v390_v24 = vmax.f32 %v275_v15, 0.0 }
 0x11a   :  { %v391_v23 = vmax.f32 %v277_v18, 0.0 }
 0x11b   :  { %v392_v26 = vmax.f32 %v279_v20, 0.0 }
 0x11c   :  { %v439_v27 = vpack.c.bf16 %v391_v23, %v389_v22 }
 0x11d   :  { %v440_v28 = vpack.c.bf16 %v392_v26, %v390_v24  ;;  %v282_v29 = vpop.f32.mrb[32].mxu0 }
 0x11e   :  { %v283_v31 = vadd.f32 %v282_v29, %v1783_v11  ;;  %v284_v32 = vpop.f32.mrb[33].mxu0 }
 0x11f   :  { %v285_v34 = vadd.f32 %v284_v32, %v1787_v12  ;;  %v286_v35 = vpop.f32.mrb[34].mxu0  ;;  %680 = vmatprep.mubr.bf16.mxu1 %v440_v28 }
 0x120   :  { %v287_v36 = vadd.f32 %v286_v35, %v1783_v11  ;;  %v288_v38 = vpop.f32.mrb[35].mxu0  ;;  %681 = vmatmul.mubr.bf16.gmra.mrb[56].mxu1 %v439_v27  ;;  %v393_v41 = vmax.f32 %v283_v31, 0.0  ;;  %v1519_v11 = vld [vmem:[%s2085_s5 + $0x74] ss:$8 sps:$4 sm:$0xff]  }
 0x121   :  { %v289_v39 = vadd.f32 %v288_v38, %v1787_v12  ;;  %v394_v43 = vmax.f32 %v285_v34, 0.0  ;;  %v1517_v12 = vld [vmem:[%s2085_s5 + $0x70] ss:$8 sps:$4 sm:$0xff]   ;;  %923 = vmatprep.subr.bf16.mxu0 %v1519_v11 }
 0x122   :  { %v395_v42 = vmax.f32 %v287_v36, 0.0  ;;  %924 = vmatpush1.bf16.msra.mxu0 %v1517_v12 }
 0x123   :  { %v396_v44 = vmax.f32 %v289_v39, 0.0 }
 0x124   :  { %v441_v45 = vpack.c.bf16 %v395_v42, %v393_v41 }
 0x125   :  { %v442_v47 = vpack.c.bf16 %v396_v44, %v394_v43 }
 0x127   :  { %688 = vmatprep.mubr.bf16.mxu1 %v442_v47 }
 0x128   :  { %689 = vmatmul.mubr.bf16.gmra.mrb[60].mxu1 %v441_v45 }
 0x129   :  { %696 = vmatprep.mubr.bf16.mxu1 %v1816_v50  ;;  %v1940_v50 = vld [vmem:[%s2086_s4] ss:$0 sm:$0xff] }
 0x130   :  { %697 = vmatmul.mubr.bf16.gmra.mrb[64].mxu1 %v1810_v46 }
 0x131   :  { %704 = vmatprep.mubr.bf16.mxu1 %v1840_v25 }
 0x138   :  { %705 = vmatmul.mubr.bf16.gmra.mrb[68].mxu1 %v1834_v21 }
 0x139   :  { %712 = vmatprep.mubr.bf16.mxu1 %v1864_v59 }
 0x140   :  { %713 = vmatmul.mubr.bf16.gmra.mrb[72].mxu1 %v1858_v55 }
 0x141   :  { %720 = vmatprep.mubr.bf16.mxu1 %v1879_v33 }
 0x148   :  { %721 = vmatmul.mubr.bf16.gmra.mrb[76].mxu1 %v1876_v30 }
 0x149   :  { %728 = vmatprep.mubr.bf16.mxu1 %v1891_v2 }
 0x150   :  { %729 = vmatmul.mubr.bf16.gmra.mrb[80].mxu1 %v1888_v62 }
 0x151   :  { %736 = vmatprep.mubr.bf16.mxu1 %v1903_v40 }
 0x158   :  { %737 = vmatmul.mubr.bf16.gmra.mrb[84].mxu1 %v1900_v37 }
 0x159   :  { %744 = vmatprep.mubr.bf16.mxu1 %v456_v17 }
 0x160   :  { %745 = vmatmul.mubr.bf16.gmra.mrb[88].mxu1 %v455_v14 }
 0x1bb   :  { %v1371_v46 = vpop.f32.mrb[28].mxu1 }
 0x1bc   :  { %v1372_v21 = vpop.f32.mrb[29].mxu1 }
 0x1bd   :  { %v1373_v25 = vadd.f32 %v1372_v21, %v1371_v46  ;;  %v1374_v55 = vpop.f32.mrb[30].mxu1 }
 0x1be   :  { %v1375_v59 = vpop.f32.mrb[31].mxu1 }
 0x1bf   :  { %v627_v30 = vadd.f32 %v1373_v25, %v1940_v50  ;;  %v1376_v33 = vadd.f32 %v1375_v59, %v1374_v55 }
 0x1c1   :  { %v630_v62 = vadd.f32 %v1376_v33, %v1940_v50  ;;  %v753_v2 = vmax.f32 %v627_v30, 0.0 }
 0x1c3   :  { %v754_v40 = vmax.f32 %v630_v62, 0.0  ;;  %v1377_v37 = vpop.f32.mrb[32].mxu1 }
 0x1c4   :  { %v1378_v48 = vpop.f32.mrb[33].mxu1 }
 0x1c5   :  { %v785_v49 = vpack.c.bf16 %v754_v40, %v753_v2  ;;  %v1379_v51 = vadd.f32 %v1378_v48, %v1377_v37  ;;  %v1380_v52 = vpop.f32.mrb[34].mxu1 }
 0x1c6   :  { %v1381_v53 = vpop.f32.mrb[35].mxu1 }
 0x1c7   :  { %v635_v54 = vadd.f32 %v1379_v51, %v1940_v50  ;;  %v1382_v56 = vadd.f32 %v1381_v53, %v1380_v52  ;;  %942 = vmatmul.mubr.bf16.vlgmr.msra.gmra.mrb[36].mxu0 %v785_v49 }
 0x1c8   :  { %951 = vmatprep.mubr.bf16.mxu0 %v1530_v1 }
 0x1c9   :  { %v638_v57 = vadd.f32 %v1382_v56, %v1940_v50  ;;  %v755_v58 = vmax.f32 %v635_v54, 0.0 }
 0x1cb   :  { %v756_v60 = vmax.f32 %v638_v57, 0.0  ;;  %v1383_v61 = vpop.f32.mrb[36].mxu1 }
 0x1cc   :  { %v1384_v63 = vpop.f32.mrb[37].mxu1 }
 0x1cd   :  { %v1385_v0 = vadd.f32 %v1384_v63, %v1383_v61  ;;  %v1386_v3 = vpop.f32.mrb[38].mxu1  ;;  %v786_v4 = vpack.c.bf16 %v756_v60, %v755_v58 }
 0x1ce   :  { %v1387_v5 = vpop.f32.mrb[39].mxu1 }
 0x1cf   :  { %v643_v9 = vadd.f32 %v1385_v0, %v1940_v50  ;;  %v1388_v13 = vadd.f32 %v1387_v5, %v1386_v3  ;;  %952 = vmatmul.mubr.bf16.gmra.mrb[40].mxu0 %v786_v4 }
 0x1d0   :  { %961 = vmatprep.mubr.bf16.mxu0 %v1530_v1 }
 0x1d1   :  { %v646_v14 = vadd.f32 %v1388_v13, %v1940_v50  ;;  %v757_v15 = vmax.f32 %v643_v9, 0.0 }
 0x1d3   :  { %v758_v16 = vmax.f32 %v646_v14, 0.0  ;;  %v1389_v17 = vpop.f32.mrb[40].mxu1 }
 0x1d4   :  { %v1390_v18 = vpop.f32.mrb[41].mxu1 }
 0x1d5   :  { %v1391_v19 = vadd.f32 %v1390_v18, %v1389_v17  ;;  %v1392_v20 = vpop.f32.mrb[42].mxu1  ;;  %v787_v22 = vpack.c.bf16 %v758_v16, %v757_v15 }
 0x1d6   :  { %v1393_v23 = vpop.f32.mrb[43].mxu1 }
 0x1d7   :  { %v651_v24 = vadd.f32 %v1391_v19, %v1940_v50  ;;  %v1394_v26 = vadd.f32 %v1393_v23, %v1392_v20  ;;  %962 = vmatmul.mubr.bf16.gmra.mrb[44].mxu0 %v787_v22 }
 0x1d8   :  { %971 = vmatprep.mubr.bf16.mxu0 %v1530_v1 }
 0x1d9   :  { %v654_v27 = vadd.f32 %v1394_v26, %v1940_v50  ;;  %v759_v28 = vmax.f32 %v651_v24, 0.0 }
 0x1db   :  { %v760_v29 = vmax.f32 %v654_v27, 0.0  ;;  %v1395_v31 = vpop.f32.mrb[44].mxu1 }
 0x1dc   :  { %v1396_v32 = vpop.f32.mrb[45].mxu1 }
 0x1dd   :  { %v1397_v34 = vadd.f32 %v1396_v32, %v1395_v31  ;;  %v1398_v35 = vpop.f32.mrb[46].mxu1  ;;  %v788_v36 = vpack.c.bf16 %v760_v29, %v759_v28 }
 0x1de   :  { %v1399_v38 = vpop.f32.mrb[47].mxu1 }
 0x1df   :  { %v659_v39 = vadd.f32 %v1397_v34, %v1940_v50  ;;  %v1400_v41 = vadd.f32 %v1399_v38, %v1398_v35  ;;  %972 = vmatmul.mubr.bf16.gmra.mrb[48].mxu0 %v788_v36 }
 0x1e0   :  { %981 = vmatprep.mubr.bf16.mxu0 %v1530_v1 }
 0x1e1   :  { %v662_v42 = vadd.f32 %v1400_v41, %v1940_v50  ;;  %v761_v43 = vmax.f32 %v659_v39, 0.0 }
 0x1e3   :  { %v762_v44 = vmax.f32 %v662_v42, 0.0  ;;  %v1401_v45 = vpop.f32.mrb[48].mxu1 }
 0x1e4   :  { %v1402_v47 = vpop.f32.mrb[49].mxu1 }
 0x1e5   :  { %v1403_v11 = vadd.f32 %v1402_v47, %v1401_v45  ;;  %v1404_v12 = vpop.f32.mrb[50].mxu1  ;;  %v789_v46 = vpack.c.bf16 %v762_v44, %v761_v43 }
 0x1e6   :  { %v1405_v21 = vpop.f32.mrb[51].mxu1 }
 0x1e7   :  { %v667_v25 = vadd.f32 %v1403_v11, %v1940_v50  ;;  %v1406_v55 = vadd.f32 %v1405_v21, %v1404_v12  ;;  %982 = vmatmul.mubr.bf16.gmra.mrb[52].mxu0 %v789_v46 }
 0x1e8   :  { %991 = vmatprep.mubr.bf16.mxu0 %v1530_v1 }
 0x1e9   :  { %v670_v59 = vadd.f32 %v1406_v55, %v1940_v50  ;;  %v763_v30 = vmax.f32 %v667_v25, 0.0 }
 0x1eb   :  { %v764_v33 = vmax.f32 %v670_v59, 0.0  ;;  %v1407_v62 = vpop.f32.mrb[52].mxu1 }
 0x1ec   :  { %v1408_v2 = vpop.f32.mrb[53].mxu1 }
 0x1ed   :  { %v1409_v40 = vadd.f32 %v1408_v2, %v1407_v62  ;;  %v1410_v37 = vpop.f32.mrb[54].mxu1  ;;  %v790_v48 = vpack.c.bf16 %v764_v33, %v763_v30 }
 0x1ee   :  { %v1411_v49 = vpop.f32.mrb[55].mxu1 }
 0x1ef   :  { %v675_v51 = vadd.f32 %v1409_v40, %v1940_v50  ;;  %v1412_v52 = vadd.f32 %v1411_v49, %v1410_v37  ;;  %992 = vmatmul.mubr.bf16.gmra.mrb[56].mxu0 %v790_v48 }
 0x1f0   :  { %1001 = vmatprep.mubr.bf16.mxu0 %v1530_v1 }
 0x1f1   :  { %v678_v53 = vadd.f32 %v1412_v52, %v1940_v50  ;;  %v765_v54 = vmax.f32 %v675_v51, 0.0 }
 0x1f3   :  { %v766_v56 = vmax.f32 %v678_v53, 0.0  ;;  %v1413_v57 = vpop.f32.mrb[56].mxu1 }
 0x1f4   :  { %v1414_v58 = vpop.f32.mrb[57].mxu1 }
 0x1f5   :  { %v1415_v60 = vadd.f32 %v1414_v58, %v1413_v57  ;;  %v1416_v61 = vpop.f32.mrb[58].mxu1  ;;  %v791_v63 = vpack.c.bf16 %v766_v56, %v765_v54 }
 0x1f6   :  { %v1417_v0 = vpop.f32.mrb[59].mxu1 }
 0x1f7   :  { %v683_v3 = vadd.f32 %v1415_v60, %v1940_v50  ;;  %v1418_v4 = vadd.f32 %v1417_v0, %v1416_v61  ;;  %1002 = vmatmul.mubr.bf16.gmra.mrb[60].mxu0 %v791_v63 }
 0x1f8   :  { %1011 = vmatprep.mubr.bf16.mxu0 %v1530_v1 }
 0x1f9   :  { %v686_v5 = vadd.f32 %v1418_v4, %v1940_v50  ;;  %v767_v9 = vmax.f32 %v683_v3, 0.0 }
 0x1fb   :  { %v768_v13 = vmax.f32 %v686_v5, 0.0  ;;  %v1419_v14 = vpop.f32.mrb[60].mxu1 }
 0x1fc   :  { %v1420_v15 = vpop.f32.mrb[61].mxu1 }
 0x1fd   :  { %v1421_v16 = vadd.f32 %v1420_v15, %v1419_v14  ;;  %v1422_v17 = vpop.f32.mrb[62].mxu1  ;;  %v792_v18 = vpack.c.bf16 %v768_v13, %v767_v9 }
 0x1fe   :  { %v1423_v19 = vpop.f32.mrb[63].mxu1 }
 0x1ff   :  { %v691_v20 = vadd.f32 %v1421_v16, %v1940_v50  ;;  %v1424_v22 = vadd.f32 %v1423_v19, %v1422_v17  ;;  %1012 = vmatmul.mubr.bf16.gmra.mrb[64].mxu0 %v792_v18 }
 0x200   :  { %1021 = vmatprep.mubr.bf16.mxu0 %v1530_v1 }
 0x201   :  { %v694_v23 = vadd.f32 %v1424_v22, %v1940_v50  ;;  %v769_v24 = vmax.f32 %v691_v20, 0.0 }
 0x203   :  { %v770_v26 = vmax.f32 %v694_v23, 0.0  ;;  %v1425_v27 = vpop.f32.mrb[64].mxu1 }
 0x204   :  { %v1426_v28 = vpop.f32.mrb[65].mxu1 }
 0x205   :  { %v1427_v29 = vadd.f32 %v1426_v28, %v1425_v27  ;;  %v1428_v31 = vpop.f32.mrb[66].mxu1  ;;  %v793_v32 = vpack.c.bf16 %v770_v26, %v769_v24 }
 0x206   :  { %v1429_v34 = vpop.f32.mrb[67].mxu1 }
 0x207   :  { %v699_v35 = vadd.f32 %v1427_v29, %v1940_v50  ;;  %v1430_v36 = vadd.f32 %v1429_v34, %v1428_v31  ;;  %1022 = vmatmul.mubr.bf16.gmra.mrb[68].mxu0 %v793_v32 }
 0x208   :  { %1031 = vmatprep.mubr.bf16.mxu0 %v1530_v1 }
 0x209   :  { %v702_v38 = vadd.f32 %v1430_v36, %v1940_v50  ;;  %v771_v39 = vmax.f32 %v699_v35, 0.0 }
 0x20b   :  { %v772_v41 = vmax.f32 %v702_v38, 0.0  ;;  %v1431_v42 = vpop.f32.mrb[68].mxu1 }
 0x20c   :  { %v1432_v43 = vpop.f32.mrb[69].mxu1 }
 0x20d   :  { %v1433_v44 = vadd.f32 %v1432_v43, %v1431_v42  ;;  %v1434_v45 = vpop.f32.mrb[70].mxu1  ;;  %v794_v47 = vpack.c.bf16 %v772_v41, %v771_v39 }
 0x20e   :  { %v1435_v11 = vpop.f32.mrb[71].mxu1 }
 0x20f   :  { %v707_v12 = vadd.f32 %v1433_v44, %v1940_v50  ;;  %v1436_v46 = vadd.f32 %v1435_v11, %v1434_v45  ;;  %1032 = vmatmul.mubr.bf16.gmra.mrb[72].mxu0 %v794_v47 }
 0x210   :  { %1041 = vmatprep.mubr.bf16.mxu0 %v1530_v1 }
 0x211   :  { %v710_v21 = vadd.f32 %v1436_v46, %v1940_v50  ;;  %v773_v25 = vmax.f32 %v707_v12, 0.0 }
 0x213   :  { %v774_v55 = vmax.f32 %v710_v21, 0.0  ;;  %v1437_v59 = vpop.f32.mrb[72].mxu1 }
 0x214   :  { %v1438_v30 = vpop.f32.mrb[73].mxu1 }
 0x215   :  { %v1439_v33 = vadd.f32 %v1438_v30, %v1437_v59  ;;  %v1440_v62 = vpop.f32.mrb[74].mxu1  ;;  %v795_v2 = vpack.c.bf16 %v774_v55, %v773_v25  ;;  %v817_v25 = vld [vmem:[%s2087_s6] sm:$0x3] }
 0x216   :  { %v1441_v40 = vpop.f32.mrb[75].mxu1  ;;  %v1993_v55 = vrot.slane %v817_v25, %v1776_v8  ;;  %v1997_v59 = vrot.slane %v817_v25, %v95_v10 }
 0x217   :  { %v715_v37 = vadd.f32 %v1439_v33, %v1940_v50  ;;  %v1442_v48 = vadd.f32 %v1441_v40, %v1440_v62  ;;  %1042 = vmatmul.mubr.bf16.gmra.mrb[76].mxu0 %v795_v2 }
 0x218   :  { %1051 = vmatprep.mubr.bf16.mxu0 %v1530_v1 }
 0x219   :  { %v718_v49 = vadd.f32 %v1442_v48, %v1940_v50  ;;  %v775_v51 = vmax.f32 %v715_v37, 0.0  ;;  %v2006_v48 = vld [vmem:[%s2088_s7] sm:$0xff] }
 0x21b   :  { %v776_v52 = vmax.f32 %v718_v49, 0.0  ;;  %v1443_v53 = vpop.f32.mrb[76].mxu1 }
 0x21c   :  { %v1444_v54 = vpop.f32.mrb[77].mxu1 }
 0x21d   :  { %v1445_v56 = vadd.f32 %v1444_v54, %v1443_v53  ;;  %v1446_v57 = vpop.f32.mrb[78].mxu1  ;;  %v796_v58 = vpack.c.bf16 %v776_v52, %v775_v51  ;;  %v1352_v51 = vcombine.high %v2006_v48, %v2006_v48 }
 0x21e   :  { %v1447_v60 = vpop.f32.mrb[79].mxu1 }
 0x21f   :  { %v723_v61 = vadd.f32 %v1445_v56, %v1940_v50  ;;  %v1448_v63 = vadd.f32 %v1447_v60, %v1446_v57  ;;  %1052 = vmatmul.mubr.bf16.gmra.mrb[80].mxu0 %v796_v58  ;;  %1238 = vmatprep.mubr.bf16.mxu1 %v1352_v51 }
 0x220   :  { %1061 = vmatprep.mubr.bf16.mxu0 %v1530_v1 }
 0x221   :  { %v726_v0 = vadd.f32 %v1448_v63, %v1940_v50  ;;  %v777_v3 = vmax.f32 %v723_v61, 0.0 }
 0x223   :  { %v778_v4 = vmax.f32 %v726_v0, 0.0  ;;  %v1449_v5 = vpop.f32.mrb[80].mxu1 }
 0x224   :  { %v1450_v9 = vpop.f32.mrb[81].mxu1 }
 0x225   :  { %v1451_v13 = vadd.f32 %v1450_v9, %v1449_v5  ;;  %v1452_v14 = vpop.f32.mrb[82].mxu1  ;;  %v797_v15 = vpack.c.bf16 %v778_v4, %v777_v3  ;;  %v14_v4 = vstv %s2089_s8 }
 0x226   :  { %v1453_v16 = vpop.f32.mrb[83].mxu1  ;;  %15 = vst [vmem:[#allocation2] sm:$0x1] %v14_v4 }
 0x227   :  { %v731_v17 = vadd.f32 %v1451_v13, %v1940_v50  ;;  %v1454_v18 = vadd.f32 %v1453_v16, %v1452_v14  ;;  %1062 = vmatmul.mubr.bf16.gmra.mrb[84].mxu0 %v797_v15 }
 0x228   :  { %1071 = vmatprep.mubr.bf16.mxu0 %v1530_v1 }
 0x229   :  { %v734_v19 = vadd.f32 %v1454_v18, %v1940_v50  ;;  %v779_v20 = vmax.f32 %v731_v17, 0.0 }
 0x22b   :  { %v780_v22 = vmax.f32 %v734_v19, 0.0  ;;  %v1455_v23 = vpop.f32.mrb[84].mxu1 }
 0x22c   :  { %v1456_v24 = vpop.f32.mrb[85].mxu1 }
 0x22d   :  { %v1457_v26 = vadd.f32 %v1456_v24, %v1455_v23  ;;  %v1458_v27 = vpop.f32.mrb[86].mxu1  ;;  %v798_v28 = vpack.c.bf16 %v780_v22, %v779_v20 }
 0x22e   :  { %v1459_v29 = vpop.f32.mrb[87].mxu1 }
 0x22f   :  { %v739_v31 = vadd.f32 %v1457_v26, %v1940_v50  ;;  %v1460_v32 = vadd.f32 %v1459_v29, %v1458_v27  ;;  %1072 = vmatmul.mubr.bf16.gmra.mrb[88].mxu0 %v798_v28  ;;  %v1247_v27 = vld [vmem:[#allocation2] sm:$0x1] }
 0x230   :  { %1081 = vmatprep.mubr.bf16.mxu0 %v1530_v1  ;;  %1250 = vperm.xlu0 %1473, %v1247_v27  }
 0x231   :  { %v742_v34 = vadd.f32 %v1460_v32, %v1940_v50  ;;  %v781_v35 = vmax.f32 %v739_v31, 0.0 }
 0x233   :  { %v782_v36 = vmax.f32 %v742_v34, 0.0  ;;  %v1461_v38 = vpop.f32.mrb[88].mxu1 }
 0x234   :  { %v1462_v39 = vpop.f32.mrb[89].mxu1 }
 0x235   :  { %v1463_v41 = vadd.f32 %v1462_v39, %v1461_v38  ;;  %v1464_v42 = vpop.f32.mrb[90].mxu1  ;;  %v799_v43 = vpack.c.bf16 %v782_v36, %v781_v35 }
 0x236   :  { %v1465_v44 = vpop.f32.mrb[91].mxu1 }
 0x237   :  { %v747_v45 = vadd.f32 %v1463_v41, %v1940_v50  ;;  %v1466_v47 = vadd.f32 %v1465_v44, %v1464_v42  ;;  %1082 = vmatmul.mubr.bf16.gmra.mrb[92].mxu0 %v799_v43 }
 0x238   :  { %1091 = vmatprep.mubr.bf16.mxu0 %v1530_v1 }
 0x239   :  { %v750_v11 = vadd.f32 %v1466_v47, %v1940_v50  ;;  %v783_v12 = vmax.f32 %v747_v45, 0.0 }
 0x23b   :  { %v784_v46 = vmax.f32 %v750_v11, 0.0 }
 0x23d   :  { %v800_v21 = vpack.c.bf16 %v784_v46, %v783_v12 }
 0x23f   :  { %1092 = vmatmul.mubr.bf16.gmra.mrb[96].mxu0 %v800_v21 }
 0x29a   :  { %v943_v30 = vpop.f32.mrb[36].mxu0 }
 0x29b   :  { %v944_v1 = vadd.f32 %v943_v30, %v1993_v55  ;;  %v945_v33 = vpop.f32.mrb[37].mxu0 }
 0x29c   :  { %v946_v50 = vadd.f32 %v945_v33, %v1997_v59  ;;  %v947_v62 = vpop.f32.mrb[38].mxu0 }
 0x29d   :  { %v948_v2 = vadd.f32 %v947_v62, %v1993_v55  ;;  %v949_v40 = vpop.f32.mrb[39].mxu0  ;;  %v1102_v49 = vmax.f32 %v944_v1, 0.0 }
 0x29e   :  { %v950_v37 = vadd.f32 %v949_v40, %v1997_v59  ;;  %v1103_v52 = vmax.f32 %v946_v50, 0.0 }
 0x29f   :  { %v1104_v10 = vmax.f32 %v948_v2, 0.0 }
 0x2a0   :  { %v1105_v53 = vmax.f32 %v950_v37, 0.0 }
 0x2a1   :  { %v1167_v54 = vpack.c.bf16 %v1104_v10, %v1102_v49 }
 0x2a2   :  { %v1168_v56 = vpack.c.bf16 %v1105_v53, %v1103_v52  ;;  %v953_v57 = vpop.f32.mrb[40].mxu0 }
 0x2a3   :  { %v954_v58 = vadd.f32 %v953_v57, %v1993_v55  ;;  %v955_v60 = vpop.f32.mrb[41].mxu0 }
 0x2a4   :  { %v956_v61 = vadd.f32 %v955_v60, %v1997_v59  ;;  %v957_v63 = vpop.f32.mrb[42].mxu0  ;;  %1206 = vmatprep.subr.bf16.mxu1 %v1168_v56 }
 0x2a5   :  { %v958_v0 = vadd.f32 %v957_v63, %v1993_v55  ;;  %v959_v3 = vpop.f32.mrb[43].mxu0  ;;  %1207 = vmatpush1.bf16.xpose.msra.mxu1 %v1167_v54  ;;  %v1106_v9 = vmax.f32 %v954_v58, 0.0 }
 0x2a6   :  { %v960_v5 = vadd.f32 %v959_v3, %v1997_v59  ;;  %v1107_v14 = vmax.f32 %v956_v61, 0.0 }
 0x2a7   :  { %v1108_v13 = vmax.f32 %v958_v0, 0.0 }
 0x2a8   :  { %v1109_v15 = vmax.f32 %v960_v5, 0.0 }
 0x2a9   :  { %v1169_v16 = vpack.c.bf16 %v1108_v13, %v1106_v9 }
 0x2aa   :  { %v1170_v17 = vpack.c.bf16 %v1109_v15, %v1107_v14  ;;  %v963_v18 = vpop.f32.mrb[44].mxu0 }
 0x2ab   :  { %v964_v19 = vadd.f32 %v963_v18, %v1993_v55  ;;  %v965_v20 = vpop.f32.mrb[45].mxu0 }
 0x2ac   :  { %v966_v22 = vadd.f32 %v965_v20, %v1997_v59  ;;  %v967_v23 = vpop.f32.mrb[46].mxu0  ;;  %1208 = vmatprep.subr.bf16.mxu1 %v1170_v17 }
 0x2ad   :  { %v968_v24 = vadd.f32 %v967_v23, %v1993_v55  ;;  %v969_v26 = vpop.f32.mrb[47].mxu0  ;;  %1209 = vmatpush1.bf16.xpose.msra.mxu1 %v1169_v16  ;;  %v1110_v29 = vmax.f32 %v964_v19, 0.0 }
 0x2ae   :  { %v970_v28 = vadd.f32 %v969_v26, %v1997_v59  ;;  %v1111_v32 = vmax.f32 %v966_v22, 0.0 }
 0x2af   :  { %v1112_v31 = vmax.f32 %v968_v24, 0.0 }
 0x2b0   :  { %v1113_v34 = vmax.f32 %v970_v28, 0.0 }
 0x2b1   :  { %v1171_v35 = vpack.c.bf16 %v1112_v31, %v1110_v29 }
 0x2b2   :  { %v1172_v36 = vpack.c.bf16 %v1113_v34, %v1111_v32  ;;  %v973_v38 = vpop.f32.mrb[48].mxu0 }
 0x2b3   :  { %v974_v39 = vadd.f32 %v973_v38, %v1993_v55  ;;  %v975_v41 = vpop.f32.mrb[49].mxu0 }
 0x2b4   :  { %v976_v42 = vadd.f32 %v975_v41, %v1997_v59  ;;  %v977_v43 = vpop.f32.mrb[50].mxu0  ;;  %1210 = vmatprep.subr.bf16.mxu1 %v1172_v36 }
 0x2b5   :  { %v978_v44 = vadd.f32 %v977_v43, %v1993_v55  ;;  %v979_v45 = vpop.f32.mrb[51].mxu0  ;;  %1211 = vmatpush1.bf16.xpose.msra.mxu1 %v1171_v35  ;;  %v1114_v11 = vmax.f32 %v974_v39, 0.0 }
 0x2b6   :  { %v980_v47 = vadd.f32 %v979_v45, %v1997_v59  ;;  %v1115_v46 = vmax.f32 %v976_v42, 0.0 }
 0x2b7   :  { %v1116_v12 = vmax.f32 %v978_v44, 0.0 }
 0x2b8   :  { %v1117_v21 = vmax.f32 %v980_v47, 0.0 }
 0x2b9   :  { %v1173_v25 = vpack.c.bf16 %v1116_v12, %v1114_v11 }
 0x2ba   :  { %v1174_v30 = vpack.c.bf16 %v1117_v21, %v1115_v46  ;;  %v983_v1 = vpop.f32.mrb[52].mxu0 }
 0x2bb   :  { %v984_v33 = vadd.f32 %v983_v1, %v1993_v55  ;;  %v985_v50 = vpop.f32.mrb[53].mxu0 }
 0x2bc   :  { %v986_v62 = vadd.f32 %v985_v50, %v1997_v59  ;;  %v987_v2 = vpop.f32.mrb[54].mxu0  ;;  %1212 = vmatprep.subr.bf16.mxu1 %v1174_v30 }
 0x2bd   :  { %v988_v40 = vadd.f32 %v987_v2, %v1993_v55  ;;  %v989_v37 = vpop.f32.mrb[55].mxu0  ;;  %1213 = vmatpush1.bf16.xpose.msra.mxu1 %v1173_v25  ;;  %v1118_v10 = vmax.f32 %v984_v33, 0.0 }
 0x2be   :  { %v990_v49 = vadd.f32 %v989_v37, %v1997_v59  ;;  %v1119_v52 = vmax.f32 %v986_v62, 0.0 }
 0x2bf   :  { %v1120_v51 = vmax.f32 %v988_v40, 0.0 }
 0x2c0   :  { %v1121_v53 = vmax.f32 %v990_v49, 0.0 }
 0x2c1   :  { %v1175_v54 = vpack.c.bf16 %v1120_v51, %v1118_v10 }
 0x2c2   :  { %v1176_v56 = vpack.c.bf16 %v1121_v53, %v1119_v52  ;;  %v993_v57 = vpop.f32.mrb[56].mxu0 }
 0x2c3   :  { %v994_v58 = vadd.f32 %v993_v57, %v1993_v55  ;;  %v995_v60 = vpop.f32.mrb[57].mxu0 }
 0x2c4   :  { %v996_v61 = vadd.f32 %v995_v60, %v1997_v59  ;;  %v997_v63 = vpop.f32.mrb[58].mxu0  ;;  %1214 = vmatprep.subr.bf16.mxu1 %v1176_v56 }
 0x2c5   :  { %v998_v0 = vadd.f32 %v997_v63, %v1993_v55  ;;  %v999_v3 = vpop.f32.mrb[59].mxu0  ;;  %1215 = vmatpush1.bf16.xpose.msra.mxu1 %v1175_v54  ;;  %v1122_v5 = vmax.f32 %v994_v58, 0.0 }
 0x2c6   :  { %v1000_v4 = vadd.f32 %v999_v3, %v1997_v59  ;;  %v1123_v13 = vmax.f32 %v996_v61, 0.0 }
 0x2c7   :  { %v1124_v9 = vmax.f32 %v998_v0, 0.0 }
 0x2c8   :  { %v1125_v14 = vmax.f32 %v1000_v4, 0.0 }
 0x2c9   :  { %v1177_v15 = vpack.c.bf16 %v1124_v9, %v1122_v5 }
 0x2ca   :  { %v1178_v16 = vpack.c.bf16 %v1125_v14, %v1123_v13  ;;  %v1003_v17 = vpop.f32.mrb[60].mxu0 }
 0x2cb   :  { %v1004_v18 = vadd.f32 %v1003_v17, %v1993_v55  ;;  %v1005_v19 = vpop.f32.mrb[61].mxu0 }
 0x2cc   :  { %v1006_v20 = vadd.f32 %v1005_v19, %v1997_v59  ;;  %v1007_v22 = vpop.f32.mrb[62].mxu0  ;;  %1216 = vmatprep.subr.bf16.mxu1 %v1178_v16 }
 0x2cd   :  { %v1008_v23 = vadd.f32 %v1007_v22, %v1993_v55  ;;  %v1009_v24 = vpop.f32.mrb[63].mxu0  ;;  %1217 = vmatpush1.bf16.xpose.msra.mxu1 %v1177_v15  ;;  %v1126_v27 = vmax.f32 %v1004_v18, 0.0 }
 0x2ce   :  { %v1010_v26 = vadd.f32 %v1009_v24, %v1997_v59  ;;  %v1127_v29 = vmax.f32 %v1006_v20, 0.0 }
 0x2cf   :  { %v1128_v28 = vmax.f32 %v1008_v23, 0.0 }
 0x2d0   :  { %v1129_v31 = vmax.f32 %v1010_v26, 0.0 }
 0x2d1   :  { %v1179_v32 = vpack.c.bf16 %v1128_v28, %v1126_v27 }
 0x2d2   :  { %v1180_v34 = vpack.c.bf16 %v1129_v31, %v1127_v29  ;;  %v1013_v35 = vpop.f32.mrb[64].mxu0 }
 0x2d3   :  { %v1014_v36 = vadd.f32 %v1013_v35, %v1993_v55  ;;  %v1015_v38 = vpop.f32.mrb[65].mxu0 }
 0x2d4   :  { %v1016_v39 = vadd.f32 %v1015_v38, %v1997_v59  ;;  %v1017_v41 = vpop.f32.mrb[66].mxu0  ;;  %1218 = vmatprep.subr.bf16.mxu1 %v1180_v34 }
 0x2d5   :  { %v1018_v42 = vadd.f32 %v1017_v41, %v1993_v55  ;;  %v1019_v43 = vpop.f32.mrb[67].mxu0  ;;  %1219 = vmatpush1.bf16.xpose.msra.mxu1 %v1179_v32  ;;  %v1130_v45 = vmax.f32 %v1014_v36, 0.0 }
 0x2d6   :  { %v1020_v44 = vadd.f32 %v1019_v43, %v1997_v59  ;;  %v1131_v11 = vmax.f32 %v1016_v39, 0.0 }
 0x2d7   :  { %v1132_v47 = vmax.f32 %v1018_v42, 0.0 }
 0x2d8   :  { %v1133_v12 = vmax.f32 %v1020_v44, 0.0 }
 0x2d9   :  { %v1181_v46 = vpack.c.bf16 %v1132_v47, %v1130_v45 }
 0x2da   :  { %v1182_v21 = vpack.c.bf16 %v1133_v12, %v1131_v11  ;;  %v1023_v25 = vpop.f32.mrb[68].mxu0 }
 0x2db   :  { %v1024_v30 = vadd.f32 %v1023_v25, %v1993_v55  ;;  %v1025_v1 = vpop.f32.mrb[69].mxu0 }
 0x2dc   :  { %v1026_v33 = vadd.f32 %v1025_v1, %v1997_v59  ;;  %v1027_v50 = vpop.f32.mrb[70].mxu0  ;;  %1220 = vmatprep.subr.bf16.mxu1 %v1182_v21 }
 0x2dd   :  { %v1028_v62 = vadd.f32 %v1027_v50, %v1993_v55  ;;  %v1029_v2 = vpop.f32.mrb[71].mxu0  ;;  %1221 = vmatpush1.bf16.xpose.msra.mxu1 %v1181_v46  ;;  %v1134_v37 = vmax.f32 %v1024_v30, 0.0 }
 0x2de   :  { %v1030_v40 = vadd.f32 %v1029_v2, %v1997_v59  ;;  %v1135_v10 = vmax.f32 %v1026_v33, 0.0 }
 0x2df   :  { %v1136_v49 = vmax.f32 %v1028_v62, 0.0 }
 0x2e0   :  { %v1137_v51 = vmax.f32 %v1030_v40, 0.0 }
 0x2e1   :  { %v1183_v52 = vpack.c.bf16 %v1136_v49, %v1134_v37 }
 0x2e2   :  { %v1184_v53 = vpack.c.bf16 %v1137_v51, %v1135_v10  ;;  %v1033_v54 = vpop.f32.mrb[72].mxu0 }
 0x2e3   :  { %v1034_v56 = vadd.f32 %v1033_v54, %v1993_v55  ;;  %v1035_v57 = vpop.f32.mrb[73].mxu0 }
 0x2e4   :  { %v1036_v58 = vadd.f32 %v1035_v57, %v1997_v59  ;;  %v1037_v60 = vpop.f32.mrb[74].mxu0  ;;  %1222 = vmatprep.subr.bf16.mxu1 %v1184_v53 }
 0x2e5   :  { %v1038_v61 = vadd.f32 %v1037_v60, %v1993_v55  ;;  %v1039_v63 = vpop.f32.mrb[75].mxu0  ;;  %1223 = vmatpush1.bf16.xpose.msra.mxu1 %v1183_v52  ;;  %v1138_v3 = vmax.f32 %v1034_v56, 0.0 }
 0x2e6   :  { %v1040_v0 = vadd.f32 %v1039_v63, %v1997_v59  ;;  %v1139_v5 = vmax.f32 %v1036_v58, 0.0 }
 0x2e7   :  { %v1140_v4 = vmax.f32 %v1038_v61, 0.0 }
 0x2e8   :  { %v1141_v9 = vmax.f32 %v1040_v0, 0.0 }
 0x2e9   :  { %v1185_v13 = vpack.c.bf16 %v1140_v4, %v1138_v3 }
 0x2ea   :  { %v1186_v14 = vpack.c.bf16 %v1141_v9, %v1139_v5  ;;  %v1043_v15 = vpop.f32.mrb[76].mxu0 }
 0x2eb   :  { %v1044_v16 = vadd.f32 %v1043_v15, %v1993_v55  ;;  %v1045_v17 = vpop.f32.mrb[77].mxu0 }
 0x2ec   :  { %v1046_v18 = vadd.f32 %v1045_v17, %v1997_v59  ;;  %v1047_v19 = vpop.f32.mrb[78].mxu0  ;;  %1224 = vmatprep.subr.bf16.mxu1 %v1186_v14 }
 0x2ed   :  { %v1048_v20 = vadd.f32 %v1047_v19, %v1993_v55  ;;  %v1049_v22 = vpop.f32.mrb[79].mxu0  ;;  %1225 = vmatpush1.bf16.xpose.msra.mxu1 %v1185_v13  ;;  %v1142_v24 = vmax.f32 %v1044_v16, 0.0 }
 0x2ee   :  { %v1050_v23 = vadd.f32 %v1049_v22, %v1997_v59  ;;  %v1143_v27 = vmax.f32 %v1046_v18, 0.0 }
 0x2ef   :  { %v1144_v26 = vmax.f32 %v1048_v20, 0.0 }
 0x2f0   :  { %v1145_v28 = vmax.f32 %v1050_v23, 0.0 }
 0x2f1   :  { %v1187_v29 = vpack.c.bf16 %v1144_v26, %v1142_v24 }
 0x2f2   :  { %v1188_v31 = vpack.c.bf16 %v1145_v28, %v1143_v27  ;;  %v1053_v32 = vpop.f32.mrb[80].mxu0 }
 0x2f3   :  { %v1054_v34 = vadd.f32 %v1053_v32, %v1993_v55  ;;  %v1055_v35 = vpop.f32.mrb[81].mxu0 }
 0x2f4   :  { %v1056_v36 = vadd.f32 %v1055_v35, %v1997_v59  ;;  %v1057_v38 = vpop.f32.mrb[82].mxu0  ;;  %1226 = vmatprep.subr.bf16.mxu1 %v1188_v31 }
 0x2f5   :  { %v1058_v39 = vadd.f32 %v1057_v38, %v1993_v55  ;;  %v1059_v41 = vpop.f32.mrb[83].mxu0  ;;  %1227 = vmatpush1.bf16.xpose.msra.mxu1 %v1187_v29  ;;  %v1146_v43 = vmax.f32 %v1054_v34, 0.0 }
 0x2f6   :  { %v1060_v42 = vadd.f32 %v1059_v41, %v1997_v59  ;;  %v1147_v45 = vmax.f32 %v1056_v36, 0.0 }
 0x2f7   :  { %v1148_v44 = vmax.f32 %v1058_v39, 0.0 }
 0x2f8   :  { %v1149_v47 = vmax.f32 %v1060_v42, 0.0 }
 0x2f9   :  { %v1189_v11 = vpack.c.bf16 %v1148_v44, %v1146_v43 }
 0x2fa   :  { %v1190_v12 = vpack.c.bf16 %v1149_v47, %v1147_v45  ;;  %v1063_v46 = vpop.f32.mrb[84].mxu0 }
 0x2fb   :  { %v1064_v21 = vadd.f32 %v1063_v46, %v1993_v55  ;;  %v1065_v25 = vpop.f32.mrb[85].mxu0 }
 0x2fc   :  { %v1066_v30 = vadd.f32 %v1065_v25, %v1997_v59  ;;  %v1067_v1 = vpop.f32.mrb[86].mxu0  ;;  %1228 = vmatprep.subr.bf16.mxu1 %v1190_v12  ;;  %v1251_v12 = vpop.permute.xlu0 %1250 }
 0x2fd   :  { %v1068_v33 = vadd.f32 %v1067_v1, %v1993_v55  ;;  %v1069_v50 = vpop.f32.mrb[87].mxu0  ;;  %1229 = vmatpush1.bf16.xpose.msra.mxu1 %v1189_v11  ;;  %v1150_v2 = vmax.f32 %v1064_v21, 0.0  ;;  %v1351_v11 = vcombine.low %v2006_v48, %v2006_v48  ;;  %v1256_v46 = vrot.slane %v1251_v12, %v1776_v8 }
 0x2fe   :  { %v1070_v62 = vadd.f32 %v1069_v50, %v1997_v59  ;;  %v1151_v37 = vmax.f32 %v1066_v30, 0.0  ;;  %v1531_v48 = vmov 1966171168  }
 0x2ff   :  { %v1152_v40 = vmax.f32 %v1068_v33, 0.0 }
 0x300   :  { %v1153_v49 = vmax.f32 %v1070_v62, 0.0 }
 0x301   :  { %v1191_v10 = vpack.c.bf16 %v1152_v40, %v1150_v2 }
 0x302   :  { %v1192_v51 = vpack.c.bf16 %v1153_v49, %v1151_v37  ;;  %v1073_v52 = vpop.f32.mrb[88].mxu0  ;;  %v1275_v49 = vunpack.c.l.s4 %v1531_v48 }
 0x303   :  { %v1074_v53 = vadd.f32 %v1073_v52, %v1993_v55  ;;  %v1075_v54 = vpop.f32.mrb[89].mxu0 }
 0x304   :  { %v1076_v56 = vadd.f32 %v1075_v54, %v1997_v59  ;;  %v1077_v57 = vpop.f32.mrb[90].mxu0  ;;  %1230 = vmatprep.subr.bf16.mxu1 %v1192_v51 }
 0x305   :  { %v1078_v58 = vadd.f32 %v1077_v57, %v1993_v55  ;;  %v1079_v60 = vpop.f32.mrb[91].mxu0  ;;  %1231 = vmatpush1.bf16.xpose.msra.mxu1 %v1191_v10  ;;  %v1154_v63 = vmax.f32 %v1074_v53, 0.0  ;;  %v1276_v10 = vunpack.c.0.s8 %v1275_v49 }
 0x306   :  { %v1080_v61 = vadd.f32 %v1079_v60, %v1997_v59  ;;  %v1155_v3 = vmax.f32 %v1076_v56, 0.0 }
 0x307   :  { %v1156_v0 = vmax.f32 %v1078_v58, 0.0  ;;  %v1279_v51 = vsub.s32 %v1276_v10, %v1773_v7 }
 0x308   :  { %v1157_v4 = vmax.f32 %v1080_v61, 0.0 }
 0x309   :  { %v1193_v5 = vpack.c.bf16 %v1156_v0, %v1154_v63 }
 0x30a   :  { %v1194_v9 = vpack.c.bf16 %v1157_v4, %v1155_v3  ;;  %v1083_v13 = vpop.f32.mrb[92].mxu0 }
 0x30b   :  { %v1084_v14 = vadd.f32 %v1083_v13, %v1993_v55  ;;  %v1085_v15 = vpop.f32.mrb[93].mxu0 }
 0x30c   :  { %v1086_v16 = vadd.f32 %v1085_v15, %v1997_v59  ;;  %v1087_v17 = vpop.f32.mrb[94].mxu0  ;;  %1232 = vmatprep.subr.bf16.mxu1 %v1194_v9 }
 0x30d   :  { %v1088_v18 = vadd.f32 %v1087_v17, %v1993_v55  ;;  %v1089_v19 = vpop.f32.mrb[95].mxu0  ;;  %1233 = vmatpush1.bf16.xpose.msra.mxu1 %v1193_v5  ;;  %v1158_v22 = vmax.f32 %v1084_v14, 0.0 }
 0x30e   :  { %v1090_v20 = vadd.f32 %v1089_v19, %v1997_v59  ;;  %v1159_v24 = vmax.f32 %v1086_v16, 0.0 }
 0x30f   :  { %v1160_v23 = vmax.f32 %v1088_v18, 0.0 }
 0x310   :  { %v1161_v26 = vmax.f32 %v1090_v20, 0.0 }
 0x311   :  { %v1195_v27 = vpack.c.bf16 %v1160_v23, %v1158_v22 }
 0x312   :  { %v1196_v28 = vpack.c.bf16 %v1161_v26, %v1159_v24  ;;  %v1093_v29 = vpop.f32.mrb[96].mxu0 }
 0x313   :  { %v1094_v31 = vadd.f32 %v1093_v29, %v1993_v55  ;;  %v1095_v32 = vpop.f32.mrb[97].mxu0 }
 0x314   :  { %v1096_v34 = vadd.f32 %v1095_v32, %v1997_v59  ;;  %v1097_v35 = vpop.f32.mrb[98].mxu0  ;;  %1234 = vmatprep.subr.bf16.mxu1 %v1196_v28 }
 0x315   :  { %v1098_v36 = vadd.f32 %v1097_v35, %v1993_v55  ;;  %v1099_v38 = vpop.f32.mrb[99].mxu0  ;;  %1235 = vmatpush1.bf16.xpose.msra.mxu1 %v1195_v27  ;;  %v1162_v41 = vmax.f32 %v1094_v31, 0.0 }
 0x316   :  { %v1100_v39 = vadd.f32 %v1099_v38, %v1997_v59  ;;  %v1163_v43 = vmax.f32 %v1096_v34, 0.0 }
 0x317   :  { %v1164_v42 = vmax.f32 %v1098_v36, 0.0 }
 0x318   :  { %v1165_v44 = vmax.f32 %v1100_v39, 0.0 }
 0x319   :  { %v1197_v45 = vpack.c.bf16 %v1164_v42, %v1162_v41 }
 0x31a   :  { %v1198_v47 = vpack.c.bf16 %v1165_v44, %v1163_v43 }
 0x31c   :  { %1236 = vmatprep.subr.bf16.mxu1 %v1198_v47 }
 0x31d   :  { %1237 = vmatpush1.bf16.xpose.msra.mxu1 %v1197_v45 }
 0x324   :  { %1239 = vmatmul.mubr.bf16.vlgmr.msra.gmra.mrb[92].mxu1 %v1351_v11 }
 0x3f7   :  { %v1240_v55 = vpop.f32.mrb[92].mxu1 }
 0x3f8   :  { %v1257_v21 = vadd.f32 %v1256_v46, %v1240_v55  ;;  %v1242_v25 = vpop.f32.mrb[93].mxu1 }
 0x3f9   :  { %v1258_v30 = vadd.f32 %v1256_v46, %v1242_v25  ;;  %v1244_v59 = vpop.f32.mrb[94].mxu1 }
 0x3fa   :  { %v1353_v1 = vmul.f32 -1.442695, %v1257_v21  ;;  %v1245_v33 = vpop.f32.mrb[95].mxu1 }
 0x3fb   :  { %v1354_v50 = vmul.f32 -1.442695, %v1258_v30 }
 0x3fc   :  { %1522 = vpow2.f32 %v1353_v1 }
 0x3fd   :  { %1524 = vpow2.f32 %v1354_v50 }
 0x406   :  { %v1523_v62 = vpop.eup %1522 }
 0x407   :  { %v1525_v2 = vpop.eup %1524  ;;  %v1265_v40 = vadd.f32 1.0, %v1523_v62 }
 0x408   :  { %v1266_v37 = vadd.f32 1.0, %v1525_v2 }
 0x409   :  { %1526 = vrcp.f32 %v1265_v40 }
 0x40a   :  { %1528 = vrcp.f32 %v1266_v37 }
 0x413   :  { %v1527_v8 = vpop.eup %1526 }
 0x414   :  { %v1529_v52 = vpop.eup %1528 }
 0x415   :  { %v1273_v53 = vcombine.low %v1527_v8, %v1529_v52 }
 0x417   :  { %v1280_v54 = vrot.slane %v1273_v53, %v1279_v51 }
 0x419   :  { %v1287_v56 = vrot.slane %v1280_v54, %v1279_v51 }
 0x41b   :  { %1293 = vst.msk [vmem:[%s2090_s9] sm:$0x3] %vm1291_vm1, %v1287_v56 }

</bundles_post_ra>
